<compile_context>
chip_gen: v5e
topology: v5e:2x2
jax: 0.10.0
libtpu: 0.0.40
codegen_flags: <defaults>
</compile_context>

<pallas_src>
import functools

import jax
import jax.numpy as jnp
from jax.experimental import pallas as pl
from jax.experimental.pallas import tpu as pltpu


def _round_up(x, m):
    return ((x + m - 1) // m) * m


def _log_sigmoid(x):
    # Numerically stable: logsigmoid(x) = min(x, 0) - log1p(exp(-|x|))
    return jnp.minimum(x, 0.0) - jnp.log1p(jnp.exp(-jnp.abs(x)))


def _vmem_capacity_bytes():
    try:
        cap = getattr(pltpu.get_tpu_info(), "vmem_capacity_bytes", None)
        if cap:
            return int(cap)
    except Exception:
        pass
    return 64 * 1024 * 1024  # conservative (v7x per-TC VMEM)


def skipgram_kernel(words_sm, ctx_sm,        # scalar-prefetch index arrays (SMEM)
                    w_hbm, c_hbm,            # embedding tables left in HBM (pl.ANY)
                    out_ref,                 # (1, Bt) f32, lane-dense
                    w_buf, ctx_buf, sem,     # scratch: VMEM gather buffers + DMA sems
                    *, num_pos, num_neg, block_b):
    K = num_pos + num_neg
    Bt = block_b
    base = pl.program_id(0) * Bt

    # ---- fused gather: per-row DMAs from the HBM tables into VMEM ----------
    @pl.loop(0, Bt)
    def _issue(b):
        row = base + b
        w_idx = words_sm[row]
        pltpu.make_async_copy(w_hbm.at[pl.ds(w_idx, 1)],
                              w_buf.at[pl.ds(b, 1)],
                              sem.at[0]).start()
        cbase = row * K
        for k in range(K):                       # K is small & static: unrolled
            c_idx = ctx_sm[cbase + k]
            pltpu.make_async_copy(c_hbm.at[pl.ds(c_idx, 1)],
                                  ctx_buf.at[k, pl.ds(b, 1)],
                                  sem.at[1]).start()

    # Drain: waits exactly mirror the issued copies (one wait per row copy),
    # which is correct regardless of how the DMA semaphore accumulates.
    # (A single byte-count-matched bulk wait per stream would shave scalar
    # overhead once validated on hardware.)
    @pl.loop(0, Bt)
    def _drain(b):
        pltpu.make_async_copy(w_hbm.at[pl.ds(0, 1)],
                              w_buf.at[pl.ds(b, 1)],
                              sem.at[0]).wait()
        for k in range(K):
            pltpu.make_async_copy(c_hbm.at[pl.ds(0, 1)],
                                  ctx_buf.at[k, pl.ds(b, 1)],
                                  sem.at[1]).wait()

    # ---- compute: per-k accumulation, no (K, Bt, Dp) product intermediate --
    w = w_buf[...]                                       # (Bt, Dp) f32
    acc = jnp.zeros((1, Bt), jnp.float32)
    for k in range(K):
        s = jnp.sum(ctx_buf[k] * w, axis=-1)[None, :]    # (1, Bt), batch on lanes
        if k < num_pos:
            acc = acc + _log_sigmoid(s) * (1.0 / num_pos)
        else:
            acc = acc + _log_sigmoid(-s) * (1.0 / num_neg)
    out_ref[...] = -acc                                  # (1, Bt) lane-dense


def skipgram_forward(w_table, c_table, words, pos_contexts, neg_contexts,
                     *, block_b=None):
    """Full fused forward pass: embedding gather, batched dot products,
    log-sigmoid and mean reductions all run inside the Pallas kernel."""
    _, D = w_table.shape
    B = int(words.shape[0])
    P = int(pos_contexts.shape[1])
    N = int(neg_contexts.shape[1])
    K = P + N

    w_table = w_table.astype(jnp.float32)
    c_table = c_table.astype(jnp.float32)

    # ---- lane-align the embedding dim (zeros don't change dot products) ----
    Dp = _round_up(D, 128)
    if Dp != D:
        w_table = jnp.pad(w_table, ((0, 0), (0, Dp - D)))
        c_table = jnp.pad(c_table, ((0, 0), (0, Dp - D)))

    # ---- choose the batch tile (generation-aware VMEM budget) --------------
    vmem_cap = _vmem_capacity_bytes()
    if block_b is not None:
        bt_cap = max(8, int(block_b))
    else:
        budget = max(8 << 20, int(vmem_cap * 0.30))
        bytes_per_row = 4 * Dp * (K + 3)     # ctx rows + w row + live temporaries
        bt_cap = max(8, budget // bytes_per_row)
    bt_cap = min(bt_cap, 2048)

    if B <= bt_cap:
        num_tiles = 1
        Bt = _round_up(B, 8)                 # single tile: block == full extent
    else:
        num_tiles = -(-B // bt_cap)
        Bt = _round_up(-(-B // num_tiles), 128)   # lane-dense output block
        num_tiles = -(-B // Bt)              # re-balance: no padding blow-up
    Bp = num_tiles * Bt

    # ---- pad + flatten indices (index-0 rows are sliced off at the end) ----
    pad_b = Bp - B
    words_p = jnp.pad(words.astype(jnp.int32), (0, pad_b))               # (Bp,)
    ctx_idx = jnp.concatenate([pos_contexts, neg_contexts], axis=1)      # (B, K)
    ctx_flat = jnp.pad(ctx_idx.astype(jnp.int32),
                       ((0, pad_b), (0, 0))).reshape(-1)                 # (Bp*K,)

    kernel = functools.partial(skipgram_kernel, num_pos=P, num_neg=N, block_b=Bt)

    cost = pl.CostEstimate(
        flops=int(2 * Bp * K * Dp + 8 * Bp * K),
        transcendentals=int(2 * Bp * K),
        bytes_accessed=int(4 * (Bp * (K + 1) * Dp + Bp * (K + 1) + Bp)),
    )

    grid_spec = pltpu.PrefetchScalarGridSpec(
        num_scalar_prefetch=2,
        grid=(num_tiles,),
        in_specs=[
            pl.BlockSpec(memory_space=pl.ANY),        # W table stays in HBM
            pl.BlockSpec(memory_space=pl.ANY),        # C table stays in HBM
        ],
        out_specs=pl.BlockSpec((1, Bt), lambda i, *_: (0, i)),
        scratch_shapes=[
            pltpu.VMEM((Bt, Dp), jnp.float32),        # gathered word rows
            pltpu.VMEM((K, Bt, Dp), jnp.float32),     # gathered context rows
            pltpu.SemaphoreType.DMA((2,)),            # [0]=w stream, [1]=ctx stream
        ],
    )

    out = pl.pallas_call(
        kernel,
        out_shape=jax.ShapeDtypeStruct((1, Bp), jnp.float32),
        grid_spec=grid_spec,
        compiler_params=pltpu.CompilerParams(
            dimension_semantics=("parallel",),
            vmem_limit_bytes=min(int(vmem_cap * 0.75), 100 * 1024 * 1024),
        ),
        cost_estimate=cost,
    )(words_p, ctx_flat, w_table, c_table)

    return out[0, :B]                                                    # (B,)


def _reference(w_table, c_table, words, pos_contexts, neg_contexts):
    w = jnp.take(w_table, words, axis=0)
    pos = jnp.take(c_table, pos_contexts, axis=0)
    neg = jnp.take(c_table, neg_contexts, axis=0)
    pos_scores = jnp.einsum("bpd,bd->bp", pos, w)
    neg_scores = jnp.einsum("bnd,bd->bn", neg, w)
    pos_loss = jnp.mean(jax.nn.log_sigmoid(pos_scores), axis=1)
    neg_loss = jnp.mean(jax.nn.log_sigmoid(-neg_scores), axis=1)
    return -(pos_loss + neg_loss)


if __name__ == "__main__":
    # ---- small test matching the toy module shapes -------------------------
    vocab_size = 50
    embedding_dim = 32
    B, P, N = 2, 4, 8

    key = jax.random.PRNGKey(0)
    k_w, k_c, k_words, k_pos, k_neg, k2 = jax.random.split(key, 6)

    w_table = jax.random.normal(k_w, (vocab_size, embedding_dim), jnp.float32) * 0.1
    c_table = jax.random.normal(k_c, (vocab_size, embedding_dim), jnp.float32) * 0.1

    words = jax.random.randint(k_words, (B,), 0, vocab_size, jnp.int32)
    pos_contexts = jax.random.randint(k_pos, (B, P), 0, vocab_size, jnp.int32)
    neg_contexts = jax.random.randint(k_neg, (B, N), 0, vocab_size, jnp.int32)

    loss = skipgram_forward(w_table, c_table, words, pos_contexts, neg_contexts)
    loss = jax.block_until_ready(loss)
    ref = _reference(w_table, c_table, words, pos_contexts, neg_contexts)
    assert loss.shape == (B,)
    assert jnp.allclose(loss, ref, atol=2e-5, rtol=1e-5), (loss, ref)

    # ---- larger check: exercises D-padding, batch padding, multi-tile grid -
    V2, D2, B2, P2, N2 = 1000, 100, 300, 5, 10
    k_w2, k_c2, k_wd2, k_p2, k_n2 = jax.random.split(k2, 5)
    w_table2 = jax.random.normal(k_w2, (V2, D2), jnp.float32) * 0.1
    c_table2 = jax.random.normal(k_c2, (V2, D2), jnp.float32) * 0.1
    words2 = jax.random.randint(k_wd2, (B2,), 0, V2, jnp.int32)
    pos2 = jax.random.randint(k_p2, (B2, P2), 0, V2, jnp.int32)
    neg2 = jax.random.randint(k_n2, (B2, N2), 0, V2, jnp.int32)

    loss2 = skipgram_forward(w_table2, c_table2, words2, pos2, neg2, block_b=128)
    loss2 = jax.block_until_ready(loss2)
    ref2 = _reference(w_table2, c_table2, words2, pos2, neg2)
    assert loss2.shape == (B2,)
    assert jnp.allclose(loss2, ref2, atol=2e-5, rtol=1e-5), (loss2, ref2)

    print("KERNEL_OK")
</pallas_src>

<mosaic_0001>
module attributes {stable_mosaic.version = 11 : i64} {
  func.func @skipgram_kernel(%arg0: i32, %arg1: memref<8xi32, #tpu.memory_space<smem>>, %arg2: memref<96xi32, #tpu.memory_space<smem>>, %arg3: memref<50x128xf32, #tpu.memory_space<any>>, %arg4: memref<50x128xf32, #tpu.memory_space<any>>, %arg5: memref<1x8xf32, #tpu.memory_space<vmem>>, %arg6: memref<8x128xf32, #tpu.memory_space<vmem>>, %arg7: memref<12x8x128xf32, #tpu.memory_space<vmem>>, %arg8: memref<2x!tpu.dma_semaphore, #tpu.memory_space<semaphore_mem>>) attributes {dimension_semantics = [#tpu.dimension_semantics<parallel>], iteration_bounds = array<i64: 1>, scalar_prefetch = 2 : i64, scratch_operands = 3 : i64, tpu.core_type = #tpu.core_type<tc>, window_params = [{}, {}, {transform_indices = @transform_2, window_bounds = array<i64: 1, 8>}]} {
    %c8_i32 = arith.constant 8 : i32
    %0 = arith.muli %arg0, %c8_i32 : i32
    %c0_i32 = arith.constant 0 : i32
    %c8_i32_0 = arith.constant 8 : i32
    %1 = arith.addi %c0_i32, %c8_i32_0 : i32
    %c1_i32 = arith.constant 1 : i32
    scf.for %arg9 = %c0_i32 to %1 step %c1_i32  : i32 {
      %c1_i32_91 = arith.constant 1 : i32
      %216 = arith.muli %arg9, %c1_i32_91 : i32
      %c0_i32_92 = arith.constant 0 : i32
      %217 = arith.addi %c0_i32_92, %216 : i32
      %218 = arith.addi %0, %217 : i32
      %219 = arith.index_cast %218 : i32 to index
      %220 = memref.load %arg1[%219] : memref<8xi32, #tpu.memory_space<smem>>
      %c0_i32_93 = arith.constant 0 : i32
      %c0_i32_94 = arith.constant 0 : i32
      %221 = tpu.memref_slice %arg3[%220, %c0_i32_94] : memref<50x128xf32, #tpu.memory_space<any>> -> memref<1x128xf32, #tpu.memory_space<any>>
      %c0_i32_95 = arith.constant 0 : i32
      %222 = tpu.memref_slice %arg6[%217, %c0_i32_95] : memref<8x128xf32, #tpu.memory_space<vmem>> -> memref<1x128xf32, #tpu.memory_space<vmem>>
      %223 = tpu.memref_slice %arg8[%c0_i32_93] : memref<2x!tpu.dma_semaphore, #tpu.memory_space<semaphore_mem>> -> memref<1x!tpu.dma_semaphore, #tpu.memory_space<semaphore_mem>>
      %224 = tpu.memref_squeeze %223 : memref<1x!tpu.dma_semaphore, #tpu.memory_space<semaphore_mem>> -> memref<!tpu.dma_semaphore, #tpu.memory_space<semaphore_mem>>
      tpu.enqueue_dma source(%221 : memref<1x128xf32, #tpu.memory_space<any>>) target(%222 : memref<1x128xf32, #tpu.memory_space<vmem>>) target_semaphore(%224 : memref<!tpu.dma_semaphore, #tpu.memory_space<semaphore_mem>>)
      %c12_i32 = arith.constant 12 : i32
      %225 = arith.muli %218, %c12_i32 : i32
      %c0_i32_96 = arith.constant 0 : i32
      %226 = arith.addi %225, %c0_i32_96 : i32
      %227 = arith.index_cast %226 : i32 to index
      %228 = memref.load %arg2[%227] : memref<96xi32, #tpu.memory_space<smem>>
      %c0_i32_97 = arith.constant 0 : i32
      %c1_i32_98 = arith.constant 1 : i32
      %c0_i32_99 = arith.constant 0 : i32
      %229 = tpu.memref_slice %arg4[%228, %c0_i32_99] : memref<50x128xf32, #tpu.memory_space<any>> -> memref<1x128xf32, #tpu.memory_space<any>>
      %c0_i32_100 = arith.constant 0 : i32
      %230 = tpu.memref_slice %arg7[%c0_i32_97, %217, %c0_i32_100] : memref<12x8x128xf32, #tpu.memory_space<vmem>> -> memref<1x1x128xf32, #tpu.memory_space<vmem>>
      %231 = tpu.memref_squeeze %230 : memref<1x1x128xf32, #tpu.memory_space<vmem>> -> memref<1x128xf32, #tpu.memory_space<vmem>>
      %232 = tpu.memref_slice %arg8[%c1_i32_98] : memref<2x!tpu.dma_semaphore, #tpu.memory_space<semaphore_mem>> -> memref<1x!tpu.dma_semaphore, #tpu.memory_space<semaphore_mem>>
      %233 = tpu.memref_squeeze %232 : memref<1x!tpu.dma_semaphore, #tpu.memory_space<semaphore_mem>> -> memref<!tpu.dma_semaphore, #tpu.memory_space<semaphore_mem>>
      tpu.enqueue_dma source(%229 : memref<1x128xf32, #tpu.memory_space<any>>) target(%231 : memref<1x128xf32, #tpu.memory_space<vmem>>) target_semaphore(%233 : memref<!tpu.dma_semaphore, #tpu.memory_space<semaphore_mem>>)
      %c1_i32_101 = arith.constant 1 : i32
      %234 = arith.addi %225, %c1_i32_101 : i32
      %235 = arith.index_cast %234 : i32 to index
      %236 = memref.load %arg2[%235] : memref<96xi32, #tpu.memory_space<smem>>
      %c1_i32_102 = arith.constant 1 : i32
      %c1_i32_103 = arith.constant 1 : i32
      %c0_i32_104 = arith.constant 0 : i32
      %237 = tpu.memref_slice %arg4[%236, %c0_i32_104] : memref<50x128xf32, #tpu.memory_space<any>> -> memref<1x128xf32, #tpu.memory_space<any>>
      %c0_i32_105 = arith.constant 0 : i32
      %238 = tpu.memref_slice %arg7[%c1_i32_102, %217, %c0_i32_105] : memref<12x8x128xf32, #tpu.memory_space<vmem>> -> memref<1x1x128xf32, #tpu.memory_space<vmem>>
      %239 = tpu.memref_squeeze %238 : memref<1x1x128xf32, #tpu.memory_space<vmem>> -> memref<1x128xf32, #tpu.memory_space<vmem>>
      %240 = tpu.memref_slice %arg8[%c1_i32_103] : memref<2x!tpu.dma_semaphore, #tpu.memory_space<semaphore_mem>> -> memref<1x!tpu.dma_semaphore, #tpu.memory_space<semaphore_mem>>
      %241 = tpu.memref_squeeze %240 : memref<1x!tpu.dma_semaphore, #tpu.memory_space<semaphore_mem>> -> memref<!tpu.dma_semaphore, #tpu.memory_space<semaphore_mem>>
      tpu.enqueue_dma source(%237 : memref<1x128xf32, #tpu.memory_space<any>>) target(%239 : memref<1x128xf32, #tpu.memory_space<vmem>>) target_semaphore(%241 : memref<!tpu.dma_semaphore, #tpu.memory_space<semaphore_mem>>)
      %c2_i32 = arith.constant 2 : i32
      %242 = arith.addi %225, %c2_i32 : i32
      %243 = arith.index_cast %242 : i32 to index
      %244 = memref.load %arg2[%243] : memref<96xi32, #tpu.memory_space<smem>>
      %c2_i32_106 = arith.constant 2 : i32
      %c1_i32_107 = arith.constant 1 : i32
      %c0_i32_108 = arith.constant 0 : i32
      %245 = tpu.memref_slice %arg4[%244, %c0_i32_108] : memref<50x128xf32, #tpu.memory_space<any>> -> memref<1x128xf32, #tpu.memory_space<any>>
      %c0_i32_109 = arith.constant 0 : i32
      %246 = tpu.memref_slice %arg7[%c2_i32_106, %217, %c0_i32_109] : memref<12x8x128xf32, #tpu.memory_space<vmem>> -> memref<1x1x128xf32, #tpu.memory_space<vmem>>
      %247 = tpu.memref_squeeze %246 : memref<1x1x128xf32, #tpu.memory_space<vmem>> -> memref<1x128xf32, #tpu.memory_space<vmem>>
      %248 = tpu.memref_slice %arg8[%c1_i32_107] : memref<2x!tpu.dma_semaphore, #tpu.memory_space<semaphore_mem>> -> memref<1x!tpu.dma_semaphore, #tpu.memory_space<semaphore_mem>>
      %249 = tpu.memref_squeeze %248 : memref<1x!tpu.dma_semaphore, #tpu.memory_space<semaphore_mem>> -> memref<!tpu.dma_semaphore, #tpu.memory_space<semaphore_mem>>
      tpu.enqueue_dma source(%245 : memref<1x128xf32, #tpu.memory_space<any>>) target(%247 : memref<1x128xf32, #tpu.memory_space<vmem>>) target_semaphore(%249 : memref<!tpu.dma_semaphore, #tpu.memory_space<semaphore_mem>>)
      %c3_i32 = arith.constant 3 : i32
      %250 = arith.addi %225, %c3_i32 : i32
      %251 = arith.index_cast %250 : i32 to index
      %252 = memref.load %arg2[%251] : memref<96xi32, #tpu.memory_space<smem>>
      %c3_i32_110 = arith.constant 3 : i32
      %c1_i32_111 = arith.constant 1 : i32
      %c0_i32_112 = arith.constant 0 : i32
      %253 = tpu.memref_slice %arg4[%252, %c0_i32_112] : memref<50x128xf32, #tpu.memory_space<any>> -> memref<1x128xf32, #tpu.memory_space<any>>
      %c0_i32_113 = arith.constant 0 : i32
      %254 = tpu.memref_slice %arg7[%c3_i32_110, %217, %c0_i32_113] : memref<12x8x128xf32, #tpu.memory_space<vmem>> -> memref<1x1x128xf32, #tpu.memory_space<vmem>>
      %255 = tpu.memref_squeeze %254 : memref<1x1x128xf32, #tpu.memory_space<vmem>> -> memref<1x128xf32, #tpu.memory_space<vmem>>
      %256 = tpu.memref_slice %arg8[%c1_i32_111] : memref<2x!tpu.dma_semaphore, #tpu.memory_space<semaphore_mem>> -> memref<1x!tpu.dma_semaphore, #tpu.memory_space<semaphore_mem>>
      %257 = tpu.memref_squeeze %256 : memref<1x!tpu.dma_semaphore, #tpu.memory_space<semaphore_mem>> -> memref<!tpu.dma_semaphore, #tpu.memory_space<semaphore_mem>>
      tpu.enqueue_dma source(%253 : memref<1x128xf32, #tpu.memory_space<any>>) target(%255 : memref<1x128xf32, #tpu.memory_space<vmem>>) target_semaphore(%257 : memref<!tpu.dma_semaphore, #tpu.memory_space<semaphore_mem>>)
      %c4_i32 = arith.constant 4 : i32
      %258 = arith.addi %225, %c4_i32 : i32
      %259 = arith.index_cast %258 : i32 to index
      %260 = memref.load %arg2[%259] : memref<96xi32, #tpu.memory_space<smem>>
      %c4_i32_114 = arith.constant 4 : i32
      %c1_i32_115 = arith.constant 1 : i32
      %c0_i32_116 = arith.constant 0 : i32
      %261 = tpu.memref_slice %arg4[%260, %c0_i32_116] : memref<50x128xf32, #tpu.memory_space<any>> -> memref<1x128xf32, #tpu.memory_space<any>>
      %c0_i32_117 = arith.constant 0 : i32
      %262 = tpu.memref_slice %arg7[%c4_i32_114, %217, %c0_i32_117] : memref<12x8x128xf32, #tpu.memory_space<vmem>> -> memref<1x1x128xf32, #tpu.memory_space<vmem>>
      %263 = tpu.memref_squeeze %262 : memref<1x1x128xf32, #tpu.memory_space<vmem>> -> memref<1x128xf32, #tpu.memory_space<vmem>>
      %264 = tpu.memref_slice %arg8[%c1_i32_115] : memref<2x!tpu.dma_semaphore, #tpu.memory_space<semaphore_mem>> -> memref<1x!tpu.dma_semaphore, #tpu.memory_space<semaphore_mem>>
      %265 = tpu.memref_squeeze %264 : memref<1x!tpu.dma_semaphore, #tpu.memory_space<semaphore_mem>> -> memref<!tpu.dma_semaphore, #tpu.memory_space<semaphore_mem>>
      tpu.enqueue_dma source(%261 : memref<1x128xf32, #tpu.memory_space<any>>) target(%263 : memref<1x128xf32, #tpu.memory_space<vmem>>) target_semaphore(%265 : memref<!tpu.dma_semaphore, #tpu.memory_space<semaphore_mem>>)
      %c5_i32 = arith.constant 5 : i32
      %266 = arith.addi %225, %c5_i32 : i32
      %267 = arith.index_cast %266 : i32 to index
      %268 = memref.load %arg2[%267] : memref<96xi32, #tpu.memory_space<smem>>
      %c5_i32_118 = arith.constant 5 : i32
      %c1_i32_119 = arith.constant 1 : i32
      %c0_i32_120 = arith.constant 0 : i32
      %269 = tpu.memref_slice %arg4[%268, %c0_i32_120] : memref<50x128xf32, #tpu.memory_space<any>> -> memref<1x128xf32, #tpu.memory_space<any>>
      %c0_i32_121 = arith.constant 0 : i32
      %270 = tpu.memref_slice %arg7[%c5_i32_118, %217, %c0_i32_121] : memref<12x8x128xf32, #tpu.memory_space<vmem>> -> memref<1x1x128xf32, #tpu.memory_space<vmem>>
      %271 = tpu.memref_squeeze %270 : memref<1x1x128xf32, #tpu.memory_space<vmem>> -> memref<1x128xf32, #tpu.memory_space<vmem>>
      %272 = tpu.memref_slice %arg8[%c1_i32_119] : memref<2x!tpu.dma_semaphore, #tpu.memory_space<semaphore_mem>> -> memref<1x!tpu.dma_semaphore, #tpu.memory_space<semaphore_mem>>
      %273 = tpu.memref_squeeze %272 : memref<1x!tpu.dma_semaphore, #tpu.memory_space<semaphore_mem>> -> memref<!tpu.dma_semaphore, #tpu.memory_space<semaphore_mem>>
      tpu.enqueue_dma source(%269 : memref<1x128xf32, #tpu.memory_space<any>>) target(%271 : memref<1x128xf32, #tpu.memory_space<vmem>>) target_semaphore(%273 : memref<!tpu.dma_semaphore, #tpu.memory_space<semaphore_mem>>)
      %c6_i32 = arith.constant 6 : i32
      %274 = arith.addi %225, %c6_i32 : i32
      %275 = arith.index_cast %274 : i32 to index
      %276 = memref.load %arg2[%275] : memref<96xi32, #tpu.memory_space<smem>>
      %c6_i32_122 = arith.constant 6 : i32
      %c1_i32_123 = arith.constant 1 : i32
      %c0_i32_124 = arith.constant 0 : i32
      %277 = tpu.memref_slice %arg4[%276, %c0_i32_124] : memref<50x128xf32, #tpu.memory_space<any>> -> memref<1x128xf32, #tpu.memory_space<any>>
      %c0_i32_125 = arith.constant 0 : i32
      %278 = tpu.memref_slice %arg7[%c6_i32_122, %217, %c0_i32_125] : memref<12x8x128xf32, #tpu.memory_space<vmem>> -> memref<1x1x128xf32, #tpu.memory_space<vmem>>
      %279 = tpu.memref_squeeze %278 : memref<1x1x128xf32, #tpu.memory_space<vmem>> -> memref<1x128xf32, #tpu.memory_space<vmem>>
      %280 = tpu.memref_slice %arg8[%c1_i32_123] : memref<2x!tpu.dma_semaphore, #tpu.memory_space<semaphore_mem>> -> memref<1x!tpu.dma_semaphore, #tpu.memory_space<semaphore_mem>>
      %281 = tpu.memref_squeeze %280 : memref<1x!tpu.dma_semaphore, #tpu.memory_space<semaphore_mem>> -> memref<!tpu.dma_semaphore, #tpu.memory_space<semaphore_mem>>
      tpu.enqueue_dma source(%277 : memref<1x128xf32, #tpu.memory_space<any>>) target(%279 : memref<1x128xf32, #tpu.memory_space<vmem>>) target_semaphore(%281 : memref<!tpu.dma_semaphore, #tpu.memory_space<semaphore_mem>>)
      %c7_i32 = arith.constant 7 : i32
      %282 = arith.addi %225, %c7_i32 : i32
      %283 = arith.index_cast %282 : i32 to index
      %284 = memref.load %arg2[%283] : memref<96xi32, #tpu.memory_space<smem>>
      %c7_i32_126 = arith.constant 7 : i32
      %c1_i32_127 = arith.constant 1 : i32
      %c0_i32_128 = arith.constant 0 : i32
      %285 = tpu.memref_slice %arg4[%284, %c0_i32_128] : memref<50x128xf32, #tpu.memory_space<any>> -> memref<1x128xf32, #tpu.memory_space<any>>
      %c0_i32_129 = arith.constant 0 : i32
      %286 = tpu.memref_slice %arg7[%c7_i32_126, %217, %c0_i32_129] : memref<12x8x128xf32, #tpu.memory_space<vmem>> -> memref<1x1x128xf32, #tpu.memory_space<vmem>>
      %287 = tpu.memref_squeeze %286 : memref<1x1x128xf32, #tpu.memory_space<vmem>> -> memref<1x128xf32, #tpu.memory_space<vmem>>
      %288 = tpu.memref_slice %arg8[%c1_i32_127] : memref<2x!tpu.dma_semaphore, #tpu.memory_space<semaphore_mem>> -> memref<1x!tpu.dma_semaphore, #tpu.memory_space<semaphore_mem>>
      %289 = tpu.memref_squeeze %288 : memref<1x!tpu.dma_semaphore, #tpu.memory_space<semaphore_mem>> -> memref<!tpu.dma_semaphore, #tpu.memory_space<semaphore_mem>>
      tpu.enqueue_dma source(%285 : memref<1x128xf32, #tpu.memory_space<any>>) target(%287 : memref<1x128xf32, #tpu.memory_space<vmem>>) target_semaphore(%289 : memref<!tpu.dma_semaphore, #tpu.memory_space<semaphore_mem>>)
      %c8_i32_130 = arith.constant 8 : i32
      %290 = arith.addi %225, %c8_i32_130 : i32
      %291 = arith.index_cast %290 : i32 to index
      %292 = memref.load %arg2[%291] : memref<96xi32, #tpu.memory_space<smem>>
      %c8_i32_131 = arith.constant 8 : i32
      %c1_i32_132 = arith.constant 1 : i32
      %c0_i32_133 = arith.constant 0 : i32
      %293 = tpu.memref_slice %arg4[%292, %c0_i32_133] : memref<50x128xf32, #tpu.memory_space<any>> -> memref<1x128xf32, #tpu.memory_space<any>>
      %c0_i32_134 = arith.constant 0 : i32
      %294 = tpu.memref_slice %arg7[%c8_i32_131, %217, %c0_i32_134] : memref<12x8x128xf32, #tpu.memory_space<vmem>> -> memref<1x1x128xf32, #tpu.memory_space<vmem>>
      %295 = tpu.memref_squeeze %294 : memref<1x1x128xf32, #tpu.memory_space<vmem>> -> memref<1x128xf32, #tpu.memory_space<vmem>>
      %296 = tpu.memref_slice %arg8[%c1_i32_132] : memref<2x!tpu.dma_semaphore, #tpu.memory_space<semaphore_mem>> -> memref<1x!tpu.dma_semaphore, #tpu.memory_space<semaphore_mem>>
      %297 = tpu.memref_squeeze %296 : memref<1x!tpu.dma_semaphore, #tpu.memory_space<semaphore_mem>> -> memref<!tpu.dma_semaphore, #tpu.memory_space<semaphore_mem>>
      tpu.enqueue_dma source(%293 : memref<1x128xf32, #tpu.memory_space<any>>) target(%295 : memref<1x128xf32, #tpu.memory_space<vmem>>) target_semaphore(%297 : memref<!tpu.dma_semaphore, #tpu.memory_space<semaphore_mem>>)
      %c9_i32 = arith.constant 9 : i32
      %298 = arith.addi %225, %c9_i32 : i32
      %299 = arith.index_cast %298 : i32 to index
      %300 = memref.load %arg2[%299] : memref<96xi32, #tpu.memory_space<smem>>
      %c9_i32_135 = arith.constant 9 : i32
      %c1_i32_136 = arith.constant 1 : i32
      %c0_i32_137 = arith.constant 0 : i32
      %301 = tpu.memref_slice %arg4[%300, %c0_i32_137] : memref<50x128xf32, #tpu.memory_space<any>> -> memref<1x128xf32, #tpu.memory_space<any>>
      %c0_i32_138 = arith.constant 0 : i32
      %302 = tpu.memref_slice %arg7[%c9_i32_135, %217, %c0_i32_138] : memref<12x8x128xf32, #tpu.memory_space<vmem>> -> memref<1x1x128xf32, #tpu.memory_space<vmem>>
      %303 = tpu.memref_squeeze %302 : memref<1x1x128xf32, #tpu.memory_space<vmem>> -> memref<1x128xf32, #tpu.memory_space<vmem>>
      %304 = tpu.memref_slice %arg8[%c1_i32_136] : memref<2x!tpu.dma_semaphore, #tpu.memory_space<semaphore_mem>> -> memref<1x!tpu.dma_semaphore, #tpu.memory_space<semaphore_mem>>
      %305 = tpu.memref_squeeze %304 : memref<1x!tpu.dma_semaphore, #tpu.memory_space<semaphore_mem>> -> memref<!tpu.dma_semaphore, #tpu.memory_space<semaphore_mem>>
      tpu.enqueue_dma source(%301 : memref<1x128xf32, #tpu.memory_space<any>>) target(%303 : memref<1x128xf32, #tpu.memory_space<vmem>>) target_semaphore(%305 : memref<!tpu.dma_semaphore, #tpu.memory_space<semaphore_mem>>)
      %c10_i32 = arith.constant 10 : i32
      %306 = arith.addi %225, %c10_i32 : i32
      %307 = arith.index_cast %306 : i32 to index
      %308 = memref.load %arg2[%307] : memref<96xi32, #tpu.memory_space<smem>>
      %c10_i32_139 = arith.constant 10 : i32
      %c1_i32_140 = arith.constant 1 : i32
      %c0_i32_141 = arith.constant 0 : i32
      %309 = tpu.memref_slice %arg4[%308, %c0_i32_141] : memref<50x128xf32, #tpu.memory_space<any>> -> memref<1x128xf32, #tpu.memory_space<any>>
      %c0_i32_142 = arith.constant 0 : i32
      %310 = tpu.memref_slice %arg7[%c10_i32_139, %217, %c0_i32_142] : memref<12x8x128xf32, #tpu.memory_space<vmem>> -> memref<1x1x128xf32, #tpu.memory_space<vmem>>
      %311 = tpu.memref_squeeze %310 : memref<1x1x128xf32, #tpu.memory_space<vmem>> -> memref<1x128xf32, #tpu.memory_space<vmem>>
      %312 = tpu.memref_slice %arg8[%c1_i32_140] : memref<2x!tpu.dma_semaphore, #tpu.memory_space<semaphore_mem>> -> memref<1x!tpu.dma_semaphore, #tpu.memory_space<semaphore_mem>>
      %313 = tpu.memref_squeeze %312 : memref<1x!tpu.dma_semaphore, #tpu.memory_space<semaphore_mem>> -> memref<!tpu.dma_semaphore, #tpu.memory_space<semaphore_mem>>
      tpu.enqueue_dma source(%309 : memref<1x128xf32, #tpu.memory_space<any>>) target(%311 : memref<1x128xf32, #tpu.memory_space<vmem>>) target_semaphore(%313 : memref<!tpu.dma_semaphore, #tpu.memory_space<semaphore_mem>>)
      %c11_i32 = arith.constant 11 : i32
      %314 = arith.addi %225, %c11_i32 : i32
      %315 = arith.index_cast %314 : i32 to index
      %316 = memref.load %arg2[%315] : memref<96xi32, #tpu.memory_space<smem>>
      %c11_i32_143 = arith.constant 11 : i32
      %c1_i32_144 = arith.constant 1 : i32
      %c0_i32_145 = arith.constant 0 : i32
      %317 = tpu.memref_slice %arg4[%316, %c0_i32_145] : memref<50x128xf32, #tpu.memory_space<any>> -> memref<1x128xf32, #tpu.memory_space<any>>
      %c0_i32_146 = arith.constant 0 : i32
      %318 = tpu.memref_slice %arg7[%c11_i32_143, %217, %c0_i32_146] : memref<12x8x128xf32, #tpu.memory_space<vmem>> -> memref<1x1x128xf32, #tpu.memory_space<vmem>>
      %319 = tpu.memref_squeeze %318 : memref<1x1x128xf32, #tpu.memory_space<vmem>> -> memref<1x128xf32, #tpu.memory_space<vmem>>
      %320 = tpu.memref_slice %arg8[%c1_i32_144] : memref<2x!tpu.dma_semaphore, #tpu.memory_space<semaphore_mem>> -> memref<1x!tpu.dma_semaphore, #tpu.memory_space<semaphore_mem>>
      %321 = tpu.memref_squeeze %320 : memref<1x!tpu.dma_semaphore, #tpu.memory_space<semaphore_mem>> -> memref<!tpu.dma_semaphore, #tpu.memory_space<semaphore_mem>>
      tpu.enqueue_dma source(%317 : memref<1x128xf32, #tpu.memory_space<any>>) target(%319 : memref<1x128xf32, #tpu.memory_space<vmem>>) target_semaphore(%321 : memref<!tpu.dma_semaphore, #tpu.memory_space<semaphore_mem>>)
    }
    %c8_i32_1 = arith.constant 8 : i32
    %c0_i32_2 = arith.constant 0 : i32
    %c8_i32_3 = arith.constant 8 : i32
    %2 = arith.addi %c0_i32_2, %c8_i32_3 : i32
    %c1_i32_4 = arith.constant 1 : i32
    scf.for %arg9 = %c0_i32_2 to %2 step %c1_i32_4  : i32 {
      %c1_i32_91 = arith.constant 1 : i32
      %216 = arith.muli %arg9, %c1_i32_91 : i32
      %c0_i32_92 = arith.constant 0 : i32
      %217 = arith.addi %c0_i32_92, %216 : i32
      %c0_i32_93 = arith.constant 0 : i32
      %c0_i32_94 = arith.constant 0 : i32
      %c0_i32_95 = arith.constant 0 : i32
      %218 = tpu.memref_slice %arg3[%c0_i32_94, %c0_i32_95] : memref<50x128xf32, #tpu.memory_space<any>> -> memref<1x128xf32, #tpu.memory_space<any>>
      %c0_i32_96 = arith.constant 0 : i32
      %219 = tpu.memref_slice %arg6[%217, %c0_i32_96] : memref<8x128xf32, #tpu.memory_space<vmem>> -> memref<1x128xf32, #tpu.memory_space<vmem>>
      %220 = tpu.memref_slice %arg8[%c0_i32_93] : memref<2x!tpu.dma_semaphore, #tpu.memory_space<semaphore_mem>> -> memref<1x!tpu.dma_semaphore, #tpu.memory_space<semaphore_mem>>
      %221 = tpu.memref_squeeze %220 : memref<1x!tpu.dma_semaphore, #tpu.memory_space<semaphore_mem>> -> memref<!tpu.dma_semaphore, #tpu.memory_space<semaphore_mem>>
      tpu.wait_dma2 semaphore(%221 : memref<!tpu.dma_semaphore, #tpu.memory_space<semaphore_mem>>) src(%218 : memref<1x128xf32, #tpu.memory_space<any>>) dst(%219 : memref<1x128xf32, #tpu.memory_space<vmem>>)
      %c0_i32_97 = arith.constant 0 : i32
      %c1_i32_98 = arith.constant 1 : i32
      %c0_i32_99 = arith.constant 0 : i32
      %c0_i32_100 = arith.constant 0 : i32
      %222 = tpu.memref_slice %arg4[%c0_i32_99, %c0_i32_100] : memref<50x128xf32, #tpu.memory_space<any>> -> memref<1x128xf32, #tpu.memory_space<any>>
      %c0_i32_101 = arith.constant 0 : i32
      %223 = tpu.memref_slice %arg7[%c0_i32_97, %217, %c0_i32_101] : memref<12x8x128xf32, #tpu.memory_space<vmem>> -> memref<1x1x128xf32, #tpu.memory_space<vmem>>
      %224 = tpu.memref_squeeze %223 : memref<1x1x128xf32, #tpu.memory_space<vmem>> -> memref<1x128xf32, #tpu.memory_space<vmem>>
      %225 = tpu.memref_slice %arg8[%c1_i32_98] : memref<2x!tpu.dma_semaphore, #tpu.memory_space<semaphore_mem>> -> memref<1x!tpu.dma_semaphore, #tpu.memory_space<semaphore_mem>>
      %226 = tpu.memref_squeeze %225 : memref<1x!tpu.dma_semaphore, #tpu.memory_space<semaphore_mem>> -> memref<!tpu.dma_semaphore, #tpu.memory_space<semaphore_mem>>
      tpu.wait_dma2 semaphore(%226 : memref<!tpu.dma_semaphore, #tpu.memory_space<semaphore_mem>>) src(%222 : memref<1x128xf32, #tpu.memory_space<any>>) dst(%224 : memref<1x128xf32, #tpu.memory_space<vmem>>)
      %c1_i32_102 = arith.constant 1 : i32
      %c1_i32_103 = arith.constant 1 : i32
      %c0_i32_104 = arith.constant 0 : i32
      %c0_i32_105 = arith.constant 0 : i32
      %227 = tpu.memref_slice %arg4[%c0_i32_104, %c0_i32_105] : memref<50x128xf32, #tpu.memory_space<any>> -> memref<1x128xf32, #tpu.memory_space<any>>
      %c0_i32_106 = arith.constant 0 : i32
      %228 = tpu.memref_slice %arg7[%c1_i32_102, %217, %c0_i32_106] : memref<12x8x128xf32, #tpu.memory_space<vmem>> -> memref<1x1x128xf32, #tpu.memory_space<vmem>>
      %229 = tpu.memref_squeeze %228 : memref<1x1x128xf32, #tpu.memory_space<vmem>> -> memref<1x128xf32, #tpu.memory_space<vmem>>
      %230 = tpu.memref_slice %arg8[%c1_i32_103] : memref<2x!tpu.dma_semaphore, #tpu.memory_space<semaphore_mem>> -> memref<1x!tpu.dma_semaphore, #tpu.memory_space<semaphore_mem>>
      %231 = tpu.memref_squeeze %230 : memref<1x!tpu.dma_semaphore, #tpu.memory_space<semaphore_mem>> -> memref<!tpu.dma_semaphore, #tpu.memory_space<semaphore_mem>>
      tpu.wait_dma2 semaphore(%231 : memref<!tpu.dma_semaphore, #tpu.memory_space<semaphore_mem>>) src(%227 : memref<1x128xf32, #tpu.memory_space<any>>) dst(%229 : memref<1x128xf32, #tpu.memory_space<vmem>>)
      %c2_i32 = arith.constant 2 : i32
      %c1_i32_107 = arith.constant 1 : i32
      %c0_i32_108 = arith.constant 0 : i32
      %c0_i32_109 = arith.constant 0 : i32
      %232 = tpu.memref_slice %arg4[%c0_i32_108, %c0_i32_109] : memref<50x128xf32, #tpu.memory_space<any>> -> memref<1x128xf32, #tpu.memory_space<any>>
      %c0_i32_110 = arith.constant 0 : i32
      %233 = tpu.memref_slice %arg7[%c2_i32, %217, %c0_i32_110] : memref<12x8x128xf32, #tpu.memory_space<vmem>> -> memref<1x1x128xf32, #tpu.memory_space<vmem>>
      %234 = tpu.memref_squeeze %233 : memref<1x1x128xf32, #tpu.memory_space<vmem>> -> memref<1x128xf32, #tpu.memory_space<vmem>>
      %235 = tpu.memref_slice %arg8[%c1_i32_107] : memref<2x!tpu.dma_semaphore, #tpu.memory_space<semaphore_mem>> -> memref<1x!tpu.dma_semaphore, #tpu.memory_space<semaphore_mem>>
      %236 = tpu.memref_squeeze %235 : memref<1x!tpu.dma_semaphore, #tpu.memory_space<semaphore_mem>> -> memref<!tpu.dma_semaphore, #tpu.memory_space<semaphore_mem>>
      tpu.wait_dma2 semaphore(%236 : memref<!tpu.dma_semaphore, #tpu.memory_space<semaphore_mem>>) src(%232 : memref<1x128xf32, #tpu.memory_space<any>>) dst(%234 : memref<1x128xf32, #tpu.memory_space<vmem>>)
      %c3_i32 = arith.constant 3 : i32
      %c1_i32_111 = arith.constant 1 : i32
      %c0_i32_112 = arith.constant 0 : i32
      %c0_i32_113 = arith.constant 0 : i32
      %237 = tpu.memref_slice %arg4[%c0_i32_112, %c0_i32_113] : memref<50x128xf32, #tpu.memory_space<any>> -> memref<1x128xf32, #tpu.memory_space<any>>
      %c0_i32_114 = arith.constant 0 : i32
      %238 = tpu.memref_slice %arg7[%c3_i32, %217, %c0_i32_114] : memref<12x8x128xf32, #tpu.memory_space<vmem>> -> memref<1x1x128xf32, #tpu.memory_space<vmem>>
      %239 = tpu.memref_squeeze %238 : memref<1x1x128xf32, #tpu.memory_space<vmem>> -> memref<1x128xf32, #tpu.memory_space<vmem>>
      %240 = tpu.memref_slice %arg8[%c1_i32_111] : memref<2x!tpu.dma_semaphore, #tpu.memory_space<semaphore_mem>> -> memref<1x!tpu.dma_semaphore, #tpu.memory_space<semaphore_mem>>
      %241 = tpu.memref_squeeze %240 : memref<1x!tpu.dma_semaphore, #tpu.memory_space<semaphore_mem>> -> memref<!tpu.dma_semaphore, #tpu.memory_space<semaphore_mem>>
      tpu.wait_dma2 semaphore(%241 : memref<!tpu.dma_semaphore, #tpu.memory_space<semaphore_mem>>) src(%237 : memref<1x128xf32, #tpu.memory_space<any>>) dst(%239 : memref<1x128xf32, #tpu.memory_space<vmem>>)
      %c4_i32 = arith.constant 4 : i32
      %c1_i32_115 = arith.constant 1 : i32
      %c0_i32_116 = arith.constant 0 : i32
      %c0_i32_117 = arith.constant 0 : i32
      %242 = tpu.memref_slice %arg4[%c0_i32_116, %c0_i32_117] : memref<50x128xf32, #tpu.memory_space<any>> -> memref<1x128xf32, #tpu.memory_space<any>>
      %c0_i32_118 = arith.constant 0 : i32
      %243 = tpu.memref_slice %arg7[%c4_i32, %217, %c0_i32_118] : memref<12x8x128xf32, #tpu.memory_space<vmem>> -> memref<1x1x128xf32, #tpu.memory_space<vmem>>
      %244 = tpu.memref_squeeze %243 : memref<1x1x128xf32, #tpu.memory_space<vmem>> -> memref<1x128xf32, #tpu.memory_space<vmem>>
      %245 = tpu.memref_slice %arg8[%c1_i32_115] : memref<2x!tpu.dma_semaphore, #tpu.memory_space<semaphore_mem>> -> memref<1x!tpu.dma_semaphore, #tpu.memory_space<semaphore_mem>>
      %246 = tpu.memref_squeeze %245 : memref<1x!tpu.dma_semaphore, #tpu.memory_space<semaphore_mem>> -> memref<!tpu.dma_semaphore, #tpu.memory_space<semaphore_mem>>
      tpu.wait_dma2 semaphore(%246 : memref<!tpu.dma_semaphore, #tpu.memory_space<semaphore_mem>>) src(%242 : memref<1x128xf32, #tpu.memory_space<any>>) dst(%244 : memref<1x128xf32, #tpu.memory_space<vmem>>)
      %c5_i32 = arith.constant 5 : i32
      %c1_i32_119 = arith.constant 1 : i32
      %c0_i32_120 = arith.constant 0 : i32
      %c0_i32_121 = arith.constant 0 : i32
      %247 = tpu.memref_slice %arg4[%c0_i32_120, %c0_i32_121] : memref<50x128xf32, #tpu.memory_space<any>> -> memref<1x128xf32, #tpu.memory_space<any>>
      %c0_i32_122 = arith.constant 0 : i32
      %248 = tpu.memref_slice %arg7[%c5_i32, %217, %c0_i32_122] : memref<12x8x128xf32, #tpu.memory_space<vmem>> -> memref<1x1x128xf32, #tpu.memory_space<vmem>>
      %249 = tpu.memref_squeeze %248 : memref<1x1x128xf32, #tpu.memory_space<vmem>> -> memref<1x128xf32, #tpu.memory_space<vmem>>
      %250 = tpu.memref_slice %arg8[%c1_i32_119] : memref<2x!tpu.dma_semaphore, #tpu.memory_space<semaphore_mem>> -> memref<1x!tpu.dma_semaphore, #tpu.memory_space<semaphore_mem>>
      %251 = tpu.memref_squeeze %250 : memref<1x!tpu.dma_semaphore, #tpu.memory_space<semaphore_mem>> -> memref<!tpu.dma_semaphore, #tpu.memory_space<semaphore_mem>>
      tpu.wait_dma2 semaphore(%251 : memref<!tpu.dma_semaphore, #tpu.memory_space<semaphore_mem>>) src(%247 : memref<1x128xf32, #tpu.memory_space<any>>) dst(%249 : memref<1x128xf32, #tpu.memory_space<vmem>>)
      %c6_i32 = arith.constant 6 : i32
      %c1_i32_123 = arith.constant 1 : i32
      %c0_i32_124 = arith.constant 0 : i32
      %c0_i32_125 = arith.constant 0 : i32
      %252 = tpu.memref_slice %arg4[%c0_i32_124, %c0_i32_125] : memref<50x128xf32, #tpu.memory_space<any>> -> memref<1x128xf32, #tpu.memory_space<any>>
      %c0_i32_126 = arith.constant 0 : i32
      %253 = tpu.memref_slice %arg7[%c6_i32, %217, %c0_i32_126] : memref<12x8x128xf32, #tpu.memory_space<vmem>> -> memref<1x1x128xf32, #tpu.memory_space<vmem>>
      %254 = tpu.memref_squeeze %253 : memref<1x1x128xf32, #tpu.memory_space<vmem>> -> memref<1x128xf32, #tpu.memory_space<vmem>>
      %255 = tpu.memref_slice %arg8[%c1_i32_123] : memref<2x!tpu.dma_semaphore, #tpu.memory_space<semaphore_mem>> -> memref<1x!tpu.dma_semaphore, #tpu.memory_space<semaphore_mem>>
      %256 = tpu.memref_squeeze %255 : memref<1x!tpu.dma_semaphore, #tpu.memory_space<semaphore_mem>> -> memref<!tpu.dma_semaphore, #tpu.memory_space<semaphore_mem>>
      tpu.wait_dma2 semaphore(%256 : memref<!tpu.dma_semaphore, #tpu.memory_space<semaphore_mem>>) src(%252 : memref<1x128xf32, #tpu.memory_space<any>>) dst(%254 : memref<1x128xf32, #tpu.memory_space<vmem>>)
      %c7_i32 = arith.constant 7 : i32
      %c1_i32_127 = arith.constant 1 : i32
      %c0_i32_128 = arith.constant 0 : i32
      %c0_i32_129 = arith.constant 0 : i32
      %257 = tpu.memref_slice %arg4[%c0_i32_128, %c0_i32_129] : memref<50x128xf32, #tpu.memory_space<any>> -> memref<1x128xf32, #tpu.memory_space<any>>
      %c0_i32_130 = arith.constant 0 : i32
      %258 = tpu.memref_slice %arg7[%c7_i32, %217, %c0_i32_130] : memref<12x8x128xf32, #tpu.memory_space<vmem>> -> memref<1x1x128xf32, #tpu.memory_space<vmem>>
      %259 = tpu.memref_squeeze %258 : memref<1x1x128xf32, #tpu.memory_space<vmem>> -> memref<1x128xf32, #tpu.memory_space<vmem>>
      %260 = tpu.memref_slice %arg8[%c1_i32_127] : memref<2x!tpu.dma_semaphore, #tpu.memory_space<semaphore_mem>> -> memref<1x!tpu.dma_semaphore, #tpu.memory_space<semaphore_mem>>
      %261 = tpu.memref_squeeze %260 : memref<1x!tpu.dma_semaphore, #tpu.memory_space<semaphore_mem>> -> memref<!tpu.dma_semaphore, #tpu.memory_space<semaphore_mem>>
      tpu.wait_dma2 semaphore(%261 : memref<!tpu.dma_semaphore, #tpu.memory_space<semaphore_mem>>) src(%257 : memref<1x128xf32, #tpu.memory_space<any>>) dst(%259 : memref<1x128xf32, #tpu.memory_space<vmem>>)
      %c8_i32_131 = arith.constant 8 : i32
      %c1_i32_132 = arith.constant 1 : i32
      %c0_i32_133 = arith.constant 0 : i32
      %c0_i32_134 = arith.constant 0 : i32
      %262 = tpu.memref_slice %arg4[%c0_i32_133, %c0_i32_134] : memref<50x128xf32, #tpu.memory_space<any>> -> memref<1x128xf32, #tpu.memory_space<any>>
      %c0_i32_135 = arith.constant 0 : i32
      %263 = tpu.memref_slice %arg7[%c8_i32_131, %217, %c0_i32_135] : memref<12x8x128xf32, #tpu.memory_space<vmem>> -> memref<1x1x128xf32, #tpu.memory_space<vmem>>
      %264 = tpu.memref_squeeze %263 : memref<1x1x128xf32, #tpu.memory_space<vmem>> -> memref<1x128xf32, #tpu.memory_space<vmem>>
      %265 = tpu.memref_slice %arg8[%c1_i32_132] : memref<2x!tpu.dma_semaphore, #tpu.memory_space<semaphore_mem>> -> memref<1x!tpu.dma_semaphore, #tpu.memory_space<semaphore_mem>>
      %266 = tpu.memref_squeeze %265 : memref<1x!tpu.dma_semaphore, #tpu.memory_space<semaphore_mem>> -> memref<!tpu.dma_semaphore, #tpu.memory_space<semaphore_mem>>
      tpu.wait_dma2 semaphore(%266 : memref<!tpu.dma_semaphore, #tpu.memory_space<semaphore_mem>>) src(%262 : memref<1x128xf32, #tpu.memory_space<any>>) dst(%264 : memref<1x128xf32, #tpu.memory_space<vmem>>)
      %c9_i32 = arith.constant 9 : i32
      %c1_i32_136 = arith.constant 1 : i32
      %c0_i32_137 = arith.constant 0 : i32
      %c0_i32_138 = arith.constant 0 : i32
      %267 = tpu.memref_slice %arg4[%c0_i32_137, %c0_i32_138] : memref<50x128xf32, #tpu.memory_space<any>> -> memref<1x128xf32, #tpu.memory_space<any>>
      %c0_i32_139 = arith.constant 0 : i32
      %268 = tpu.memref_slice %arg7[%c9_i32, %217, %c0_i32_139] : memref<12x8x128xf32, #tpu.memory_space<vmem>> -> memref<1x1x128xf32, #tpu.memory_space<vmem>>
      %269 = tpu.memref_squeeze %268 : memref<1x1x128xf32, #tpu.memory_space<vmem>> -> memref<1x128xf32, #tpu.memory_space<vmem>>
      %270 = tpu.memref_slice %arg8[%c1_i32_136] : memref<2x!tpu.dma_semaphore, #tpu.memory_space<semaphore_mem>> -> memref<1x!tpu.dma_semaphore, #tpu.memory_space<semaphore_mem>>
      %271 = tpu.memref_squeeze %270 : memref<1x!tpu.dma_semaphore, #tpu.memory_space<semaphore_mem>> -> memref<!tpu.dma_semaphore, #tpu.memory_space<semaphore_mem>>
      tpu.wait_dma2 semaphore(%271 : memref<!tpu.dma_semaphore, #tpu.memory_space<semaphore_mem>>) src(%267 : memref<1x128xf32, #tpu.memory_space<any>>) dst(%269 : memref<1x128xf32, #tpu.memory_space<vmem>>)
      %c10_i32 = arith.constant 10 : i32
      %c1_i32_140 = arith.constant 1 : i32
      %c0_i32_141 = arith.constant 0 : i32
      %c0_i32_142 = arith.constant 0 : i32
      %272 = tpu.memref_slice %arg4[%c0_i32_141, %c0_i32_142] : memref<50x128xf32, #tpu.memory_space<any>> -> memref<1x128xf32, #tpu.memory_space<any>>
      %c0_i32_143 = arith.constant 0 : i32
      %273 = tpu.memref_slice %arg7[%c10_i32, %217, %c0_i32_143] : memref<12x8x128xf32, #tpu.memory_space<vmem>> -> memref<1x1x128xf32, #tpu.memory_space<vmem>>
      %274 = tpu.memref_squeeze %273 : memref<1x1x128xf32, #tpu.memory_space<vmem>> -> memref<1x128xf32, #tpu.memory_space<vmem>>
      %275 = tpu.memref_slice %arg8[%c1_i32_140] : memref<2x!tpu.dma_semaphore, #tpu.memory_space<semaphore_mem>> -> memref<1x!tpu.dma_semaphore, #tpu.memory_space<semaphore_mem>>
      %276 = tpu.memref_squeeze %275 : memref<1x!tpu.dma_semaphore, #tpu.memory_space<semaphore_mem>> -> memref<!tpu.dma_semaphore, #tpu.memory_space<semaphore_mem>>
      tpu.wait_dma2 semaphore(%276 : memref<!tpu.dma_semaphore, #tpu.memory_space<semaphore_mem>>) src(%272 : memref<1x128xf32, #tpu.memory_space<any>>) dst(%274 : memref<1x128xf32, #tpu.memory_space<vmem>>)
      %c11_i32 = arith.constant 11 : i32
      %c1_i32_144 = arith.constant 1 : i32
      %c0_i32_145 = arith.constant 0 : i32
      %c0_i32_146 = arith.constant 0 : i32
      %277 = tpu.memref_slice %arg4[%c0_i32_145, %c0_i32_146] : memref<50x128xf32, #tpu.memory_space<any>> -> memref<1x128xf32, #tpu.memory_space<any>>
      %c0_i32_147 = arith.constant 0 : i32
      %278 = tpu.memref_slice %arg7[%c11_i32, %217, %c0_i32_147] : memref<12x8x128xf32, #tpu.memory_space<vmem>> -> memref<1x1x128xf32, #tpu.memory_space<vmem>>
      %279 = tpu.memref_squeeze %278 : memref<1x1x128xf32, #tpu.memory_space<vmem>> -> memref<1x128xf32, #tpu.memory_space<vmem>>
      %280 = tpu.memref_slice %arg8[%c1_i32_144] : memref<2x!tpu.dma_semaphore, #tpu.memory_space<semaphore_mem>> -> memref<1x!tpu.dma_semaphore, #tpu.memory_space<semaphore_mem>>
      %281 = tpu.memref_squeeze %280 : memref<1x!tpu.dma_semaphore, #tpu.memory_space<semaphore_mem>> -> memref<!tpu.dma_semaphore, #tpu.memory_space<semaphore_mem>>
      tpu.wait_dma2 semaphore(%281 : memref<!tpu.dma_semaphore, #tpu.memory_space<semaphore_mem>>) src(%277 : memref<1x128xf32, #tpu.memory_space<any>>) dst(%279 : memref<1x128xf32, #tpu.memory_space<vmem>>)
    }
    %c8_i32_5 = arith.constant 8 : i32
    %c0 = arith.constant 0 : index
    %c0_6 = arith.constant 0 : index
    %3 = vector.load %arg6[%c0, %c0_6] : memref<8x128xf32, #tpu.memory_space<vmem>>, vector<8x128xf32>
    %cst = arith.constant 0.000000e+00 : f32
    %4 = vector.broadcast %cst : f32 to vector<1x8xf32>
    %c0_7 = arith.constant 0 : index
    %c0_8 = arith.constant 0 : index
    %c0_9 = arith.constant 0 : index
    %5 = vector.load %arg7[%c0_7, %c0_8, %c0_9] : memref<12x8x128xf32, #tpu.memory_space<vmem>>, vector<1x8x128xf32>
    %6 = vector.shape_cast %5 : vector<1x8x128xf32> to vector<8x128xf32>
    %7 = arith.mulf %6, %3 : vector<8x128xf32>
    %cst_10 = arith.constant dense<0.000000e+00> : vector<8xf32>
    %8 = vector.multi_reduction <add>, %7, %cst_10 [1] : vector<8x128xf32> to vector<8xf32>
    %9 = vector.shape_cast %8 : vector<8xf32> to vector<1x8xf32>
    %cst_11 = arith.constant 0.000000e+00 : f32
    %10 = vector.broadcast %cst_11 : f32 to vector<1x8xf32>
    %11 = arith.minimumf %9, %10 : vector<1x8xf32>
    %12 = math.absf %9 : vector<1x8xf32>
    %cst_12 = arith.constant 0.000000e+00 : f32
    %13 = vector.broadcast %cst_12 : f32 to vector<1x8xf32>
    %14 = arith.subf %13, %12 : vector<1x8xf32>
    %15 = math.exp %14 : vector<1x8xf32>
    %16 = math.log1p %15 : vector<1x8xf32>
    %17 = arith.subf %11, %16 : vector<1x8xf32>
    %cst_13 = arith.constant 2.500000e-01 : f32
    %18 = vector.broadcast %cst_13 : f32 to vector<1x8xf32>
    %19 = arith.mulf %17, %18 : vector<1x8xf32>
    %20 = arith.addf %4, %19 : vector<1x8xf32>
    %c1 = arith.constant 1 : index
    %c0_14 = arith.constant 0 : index
    %c0_15 = arith.constant 0 : index
    %21 = vector.load %arg7[%c1, %c0_14, %c0_15] : memref<12x8x128xf32, #tpu.memory_space<vmem>>, vector<1x8x128xf32>
    %22 = vector.shape_cast %21 : vector<1x8x128xf32> to vector<8x128xf32>
    %23 = arith.mulf %22, %3 : vector<8x128xf32>
    %cst_16 = arith.constant dense<0.000000e+00> : vector<8xf32>
    %24 = vector.multi_reduction <add>, %23, %cst_16 [1] : vector<8x128xf32> to vector<8xf32>
    %25 = vector.shape_cast %24 : vector<8xf32> to vector<1x8xf32>
    %cst_17 = arith.constant 0.000000e+00 : f32
    %26 = vector.broadcast %cst_17 : f32 to vector<1x8xf32>
    %27 = arith.minimumf %25, %26 : vector<1x8xf32>
    %28 = math.absf %25 : vector<1x8xf32>
    %cst_18 = arith.constant 0.000000e+00 : f32
    %29 = vector.broadcast %cst_18 : f32 to vector<1x8xf32>
    %30 = arith.subf %29, %28 : vector<1x8xf32>
    %31 = math.exp %30 : vector<1x8xf32>
    %32 = math.log1p %31 : vector<1x8xf32>
    %33 = arith.subf %27, %32 : vector<1x8xf32>
    %cst_19 = arith.constant 2.500000e-01 : f32
    %34 = vector.broadcast %cst_19 : f32 to vector<1x8xf32>
    %35 = arith.mulf %33, %34 : vector<1x8xf32>
    %36 = arith.addf %20, %35 : vector<1x8xf32>
    %c2 = arith.constant 2 : index
    %c0_20 = arith.constant 0 : index
    %c0_21 = arith.constant 0 : index
    %37 = vector.load %arg7[%c2, %c0_20, %c0_21] : memref<12x8x128xf32, #tpu.memory_space<vmem>>, vector<1x8x128xf32>
    %38 = vector.shape_cast %37 : vector<1x8x128xf32> to vector<8x128xf32>
    %39 = arith.mulf %38, %3 : vector<8x128xf32>
    %cst_22 = arith.constant dense<0.000000e+00> : vector<8xf32>
    %40 = vector.multi_reduction <add>, %39, %cst_22 [1] : vector<8x128xf32> to vector<8xf32>
    %41 = vector.shape_cast %40 : vector<8xf32> to vector<1x8xf32>
    %cst_23 = arith.constant 0.000000e+00 : f32
    %42 = vector.broadcast %cst_23 : f32 to vector<1x8xf32>
    %43 = arith.minimumf %41, %42 : vector<1x8xf32>
    %44 = math.absf %41 : vector<1x8xf32>
    %cst_24 = arith.constant 0.000000e+00 : f32
    %45 = vector.broadcast %cst_24 : f32 to vector<1x8xf32>
    %46 = arith.subf %45, %44 : vector<1x8xf32>
    %47 = math.exp %46 : vector<1x8xf32>
    %48 = math.log1p %47 : vector<1x8xf32>
    %49 = arith.subf %43, %48 : vector<1x8xf32>
    %cst_25 = arith.constant 2.500000e-01 : f32
    %50 = vector.broadcast %cst_25 : f32 to vector<1x8xf32>
    %51 = arith.mulf %49, %50 : vector<1x8xf32>
    %52 = arith.addf %36, %51 : vector<1x8xf32>
    %c3 = arith.constant 3 : index
    %c0_26 = arith.constant 0 : index
    %c0_27 = arith.constant 0 : index
    %53 = vector.load %arg7[%c3, %c0_26, %c0_27] : memref<12x8x128xf32, #tpu.memory_space<vmem>>, vector<1x8x128xf32>
    %54 = vector.shape_cast %53 : vector<1x8x128xf32> to vector<8x128xf32>
    %55 = arith.mulf %54, %3 : vector<8x128xf32>
    %cst_28 = arith.constant dense<0.000000e+00> : vector<8xf32>
    %56 = vector.multi_reduction <add>, %55, %cst_28 [1] : vector<8x128xf32> to vector<8xf32>
    %57 = vector.shape_cast %56 : vector<8xf32> to vector<1x8xf32>
    %cst_29 = arith.constant 0.000000e+00 : f32
    %58 = vector.broadcast %cst_29 : f32 to vector<1x8xf32>
    %59 = arith.minimumf %57, %58 : vector<1x8xf32>
    %60 = math.absf %57 : vector<1x8xf32>
    %cst_30 = arith.constant 0.000000e+00 : f32
    %61 = vector.broadcast %cst_30 : f32 to vector<1x8xf32>
    %62 = arith.subf %61, %60 : vector<1x8xf32>
    %63 = math.exp %62 : vector<1x8xf32>
    %64 = math.log1p %63 : vector<1x8xf32>
    %65 = arith.subf %59, %64 : vector<1x8xf32>
    %cst_31 = arith.constant 2.500000e-01 : f32
    %66 = vector.broadcast %cst_31 : f32 to vector<1x8xf32>
    %67 = arith.mulf %65, %66 : vector<1x8xf32>
    %68 = arith.addf %52, %67 : vector<1x8xf32>
    %c4 = arith.constant 4 : index
    %c0_32 = arith.constant 0 : index
    %c0_33 = arith.constant 0 : index
    %69 = vector.load %arg7[%c4, %c0_32, %c0_33] : memref<12x8x128xf32, #tpu.memory_space<vmem>>, vector<1x8x128xf32>
    %70 = vector.shape_cast %69 : vector<1x8x128xf32> to vector<8x128xf32>
    %71 = arith.mulf %70, %3 : vector<8x128xf32>
    %cst_34 = arith.constant dense<0.000000e+00> : vector<8xf32>
    %72 = vector.multi_reduction <add>, %71, %cst_34 [1] : vector<8x128xf32> to vector<8xf32>
    %73 = vector.shape_cast %72 : vector<8xf32> to vector<1x8xf32>
    %cst_35 = arith.constant 0.000000e+00 : f32
    %74 = vector.broadcast %cst_35 : f32 to vector<1x8xf32>
    %75 = arith.subf %74, %73 : vector<1x8xf32>
    %cst_36 = arith.constant 0.000000e+00 : f32
    %76 = vector.broadcast %cst_36 : f32 to vector<1x8xf32>
    %77 = arith.minimumf %75, %76 : vector<1x8xf32>
    %78 = math.absf %75 : vector<1x8xf32>
    %cst_37 = arith.constant 0.000000e+00 : f32
    %79 = vector.broadcast %cst_37 : f32 to vector<1x8xf32>
    %80 = arith.subf %79, %78 : vector<1x8xf32>
    %81 = math.exp %80 : vector<1x8xf32>
    %82 = math.log1p %81 : vector<1x8xf32>
    %83 = arith.subf %77, %82 : vector<1x8xf32>
    %cst_38 = arith.constant 1.250000e-01 : f32
    %84 = vector.broadcast %cst_38 : f32 to vector<1x8xf32>
    %85 = arith.mulf %83, %84 : vector<1x8xf32>
    %86 = arith.addf %68, %85 : vector<1x8xf32>
    %c5 = arith.constant 5 : index
    %c0_39 = arith.constant 0 : index
    %c0_40 = arith.constant 0 : index
    %87 = vector.load %arg7[%c5, %c0_39, %c0_40] : memref<12x8x128xf32, #tpu.memory_space<vmem>>, vector<1x8x128xf32>
    %88 = vector.shape_cast %87 : vector<1x8x128xf32> to vector<8x128xf32>
    %89 = arith.mulf %88, %3 : vector<8x128xf32>
    %cst_41 = arith.constant dense<0.000000e+00> : vector<8xf32>
    %90 = vector.multi_reduction <add>, %89, %cst_41 [1] : vector<8x128xf32> to vector<8xf32>
    %91 = vector.shape_cast %90 : vector<8xf32> to vector<1x8xf32>
    %cst_42 = arith.constant 0.000000e+00 : f32
    %92 = vector.broadcast %cst_42 : f32 to vector<1x8xf32>
    %93 = arith.subf %92, %91 : vector<1x8xf32>
    %cst_43 = arith.constant 0.000000e+00 : f32
    %94 = vector.broadcast %cst_43 : f32 to vector<1x8xf32>
    %95 = arith.minimumf %93, %94 : vector<1x8xf32>
    %96 = math.absf %93 : vector<1x8xf32>
    %cst_44 = arith.constant 0.000000e+00 : f32
    %97 = vector.broadcast %cst_44 : f32 to vector<1x8xf32>
    %98 = arith.subf %97, %96 : vector<1x8xf32>
    %99 = math.exp %98 : vector<1x8xf32>
    %100 = math.log1p %99 : vector<1x8xf32>
    %101 = arith.subf %95, %100 : vector<1x8xf32>
    %cst_45 = arith.constant 1.250000e-01 : f32
    %102 = vector.broadcast %cst_45 : f32 to vector<1x8xf32>
    %103 = arith.mulf %101, %102 : vector<1x8xf32>
    %104 = arith.addf %86, %103 : vector<1x8xf32>
    %c6 = arith.constant 6 : index
    %c0_46 = arith.constant 0 : index
    %c0_47 = arith.constant 0 : index
    %105 = vector.load %arg7[%c6, %c0_46, %c0_47] : memref<12x8x128xf32, #tpu.memory_space<vmem>>, vector<1x8x128xf32>
    %106 = vector.shape_cast %105 : vector<1x8x128xf32> to vector<8x128xf32>
    %107 = arith.mulf %106, %3 : vector<8x128xf32>
    %cst_48 = arith.constant dense<0.000000e+00> : vector<8xf32>
    %108 = vector.multi_reduction <add>, %107, %cst_48 [1] : vector<8x128xf32> to vector<8xf32>
    %109 = vector.shape_cast %108 : vector<8xf32> to vector<1x8xf32>
    %cst_49 = arith.constant 0.000000e+00 : f32
    %110 = vector.broadcast %cst_49 : f32 to vector<1x8xf32>
    %111 = arith.subf %110, %109 : vector<1x8xf32>
    %cst_50 = arith.constant 0.000000e+00 : f32
    %112 = vector.broadcast %cst_50 : f32 to vector<1x8xf32>
    %113 = arith.minimumf %111, %112 : vector<1x8xf32>
    %114 = math.absf %111 : vector<1x8xf32>
    %cst_51 = arith.constant 0.000000e+00 : f32
    %115 = vector.broadcast %cst_51 : f32 to vector<1x8xf32>
    %116 = arith.subf %115, %114 : vector<1x8xf32>
    %117 = math.exp %116 : vector<1x8xf32>
    %118 = math.log1p %117 : vector<1x8xf32>
    %119 = arith.subf %113, %118 : vector<1x8xf32>
    %cst_52 = arith.constant 1.250000e-01 : f32
    %120 = vector.broadcast %cst_52 : f32 to vector<1x8xf32>
    %121 = arith.mulf %119, %120 : vector<1x8xf32>
    %122 = arith.addf %104, %121 : vector<1x8xf32>
    %c7 = arith.constant 7 : index
    %c0_53 = arith.constant 0 : index
    %c0_54 = arith.constant 0 : index
    %123 = vector.load %arg7[%c7, %c0_53, %c0_54] : memref<12x8x128xf32, #tpu.memory_space<vmem>>, vector<1x8x128xf32>
    %124 = vector.shape_cast %123 : vector<1x8x128xf32> to vector<8x128xf32>
    %125 = arith.mulf %124, %3 : vector<8x128xf32>
    %cst_55 = arith.constant dense<0.000000e+00> : vector<8xf32>
    %126 = vector.multi_reduction <add>, %125, %cst_55 [1] : vector<8x128xf32> to vector<8xf32>
    %127 = vector.shape_cast %126 : vector<8xf32> to vector<1x8xf32>
    %cst_56 = arith.constant 0.000000e+00 : f32
    %128 = vector.broadcast %cst_56 : f32 to vector<1x8xf32>
    %129 = arith.subf %128, %127 : vector<1x8xf32>
    %cst_57 = arith.constant 0.000000e+00 : f32
    %130 = vector.broadcast %cst_57 : f32 to vector<1x8xf32>
    %131 = arith.minimumf %129, %130 : vector<1x8xf32>
    %132 = math.absf %129 : vector<1x8xf32>
    %cst_58 = arith.constant 0.000000e+00 : f32
    %133 = vector.broadcast %cst_58 : f32 to vector<1x8xf32>
    %134 = arith.subf %133, %132 : vector<1x8xf32>
    %135 = math.exp %134 : vector<1x8xf32>
    %136 = math.log1p %135 : vector<1x8xf32>
    %137 = arith.subf %131, %136 : vector<1x8xf32>
    %cst_59 = arith.constant 1.250000e-01 : f32
    %138 = vector.broadcast %cst_59 : f32 to vector<1x8xf32>
    %139 = arith.mulf %137, %138 : vector<1x8xf32>
    %140 = arith.addf %122, %139 : vector<1x8xf32>
    %c8 = arith.constant 8 : index
    %c0_60 = arith.constant 0 : index
    %c0_61 = arith.constant 0 : index
    %141 = vector.load %arg7[%c8, %c0_60, %c0_61] : memref<12x8x128xf32, #tpu.memory_space<vmem>>, vector<1x8x128xf32>
    %142 = vector.shape_cast %141 : vector<1x8x128xf32> to vector<8x128xf32>
    %143 = arith.mulf %142, %3 : vector<8x128xf32>
    %cst_62 = arith.constant dense<0.000000e+00> : vector<8xf32>
    %144 = vector.multi_reduction <add>, %143, %cst_62 [1] : vector<8x128xf32> to vector<8xf32>
    %145 = vector.shape_cast %144 : vector<8xf32> to vector<1x8xf32>
    %cst_63 = arith.constant 0.000000e+00 : f32
    %146 = vector.broadcast %cst_63 : f32 to vector<1x8xf32>
    %147 = arith.subf %146, %145 : vector<1x8xf32>
    %cst_64 = arith.constant 0.000000e+00 : f32
    %148 = vector.broadcast %cst_64 : f32 to vector<1x8xf32>
    %149 = arith.minimumf %147, %148 : vector<1x8xf32>
    %150 = math.absf %147 : vector<1x8xf32>
    %cst_65 = arith.constant 0.000000e+00 : f32
    %151 = vector.broadcast %cst_65 : f32 to vector<1x8xf32>
    %152 = arith.subf %151, %150 : vector<1x8xf32>
    %153 = math.exp %152 : vector<1x8xf32>
    %154 = math.log1p %153 : vector<1x8xf32>
    %155 = arith.subf %149, %154 : vector<1x8xf32>
    %cst_66 = arith.constant 1.250000e-01 : f32
    %156 = vector.broadcast %cst_66 : f32 to vector<1x8xf32>
    %157 = arith.mulf %155, %156 : vector<1x8xf32>
    %158 = arith.addf %140, %157 : vector<1x8xf32>
    %c9 = arith.constant 9 : index
    %c0_67 = arith.constant 0 : index
    %c0_68 = arith.constant 0 : index
    %159 = vector.load %arg7[%c9, %c0_67, %c0_68] : memref<12x8x128xf32, #tpu.memory_space<vmem>>, vector<1x8x128xf32>
    %160 = vector.shape_cast %159 : vector<1x8x128xf32> to vector<8x128xf32>
    %161 = arith.mulf %160, %3 : vector<8x128xf32>
    %cst_69 = arith.constant dense<0.000000e+00> : vector<8xf32>
    %162 = vector.multi_reduction <add>, %161, %cst_69 [1] : vector<8x128xf32> to vector<8xf32>
    %163 = vector.shape_cast %162 : vector<8xf32> to vector<1x8xf32>
    %cst_70 = arith.constant 0.000000e+00 : f32
    %164 = vector.broadcast %cst_70 : f32 to vector<1x8xf32>
    %165 = arith.subf %164, %163 : vector<1x8xf32>
    %cst_71 = arith.constant 0.000000e+00 : f32
    %166 = vector.broadcast %cst_71 : f32 to vector<1x8xf32>
    %167 = arith.minimumf %165, %166 : vector<1x8xf32>
    %168 = math.absf %165 : vector<1x8xf32>
    %cst_72 = arith.constant 0.000000e+00 : f32
    %169 = vector.broadcast %cst_72 : f32 to vector<1x8xf32>
    %170 = arith.subf %169, %168 : vector<1x8xf32>
    %171 = math.exp %170 : vector<1x8xf32>
    %172 = math.log1p %171 : vector<1x8xf32>
    %173 = arith.subf %167, %172 : vector<1x8xf32>
    %cst_73 = arith.constant 1.250000e-01 : f32
    %174 = vector.broadcast %cst_73 : f32 to vector<1x8xf32>
    %175 = arith.mulf %173, %174 : vector<1x8xf32>
    %176 = arith.addf %158, %175 : vector<1x8xf32>
    %c10 = arith.constant 10 : index
    %c0_74 = arith.constant 0 : index
    %c0_75 = arith.constant 0 : index
    %177 = vector.load %arg7[%c10, %c0_74, %c0_75] : memref<12x8x128xf32, #tpu.memory_space<vmem>>, vector<1x8x128xf32>
    %178 = vector.shape_cast %177 : vector<1x8x128xf32> to vector<8x128xf32>
    %179 = arith.mulf %178, %3 : vector<8x128xf32>
    %cst_76 = arith.constant dense<0.000000e+00> : vector<8xf32>
    %180 = vector.multi_reduction <add>, %179, %cst_76 [1] : vector<8x128xf32> to vector<8xf32>
    %181 = vector.shape_cast %180 : vector<8xf32> to vector<1x8xf32>
    %cst_77 = arith.constant 0.000000e+00 : f32
    %182 = vector.broadcast %cst_77 : f32 to vector<1x8xf32>
    %183 = arith.subf %182, %181 : vector<1x8xf32>
    %cst_78 = arith.constant 0.000000e+00 : f32
    %184 = vector.broadcast %cst_78 : f32 to vector<1x8xf32>
    %185 = arith.minimumf %183, %184 : vector<1x8xf32>
    %186 = math.absf %183 : vector<1x8xf32>
    %cst_79 = arith.constant 0.000000e+00 : f32
    %187 = vector.broadcast %cst_79 : f32 to vector<1x8xf32>
    %188 = arith.subf %187, %186 : vector<1x8xf32>
    %189 = math.exp %188 : vector<1x8xf32>
    %190 = math.log1p %189 : vector<1x8xf32>
    %191 = arith.subf %185, %190 : vector<1x8xf32>
    %cst_80 = arith.constant 1.250000e-01 : f32
    %192 = vector.broadcast %cst_80 : f32 to vector<1x8xf32>
    %193 = arith.mulf %191, %192 : vector<1x8xf32>
    %194 = arith.addf %176, %193 : vector<1x8xf32>
    %c11 = arith.constant 11 : index
    %c0_81 = arith.constant 0 : index
    %c0_82 = arith.constant 0 : index
    %195 = vector.load %arg7[%c11, %c0_81, %c0_82] : memref<12x8x128xf32, #tpu.memory_space<vmem>>, vector<1x8x128xf32>
    %196 = vector.shape_cast %195 : vector<1x8x128xf32> to vector<8x128xf32>
    %197 = arith.mulf %196, %3 : vector<8x128xf32>
    %cst_83 = arith.constant dense<0.000000e+00> : vector<8xf32>
    %198 = vector.multi_reduction <add>, %197, %cst_83 [1] : vector<8x128xf32> to vector<8xf32>
    %199 = vector.shape_cast %198 : vector<8xf32> to vector<1x8xf32>
    %cst_84 = arith.constant 0.000000e+00 : f32
    %200 = vector.broadcast %cst_84 : f32 to vector<1x8xf32>
    %201 = arith.subf %200, %199 : vector<1x8xf32>
    %cst_85 = arith.constant 0.000000e+00 : f32
    %202 = vector.broadcast %cst_85 : f32 to vector<1x8xf32>
    %203 = arith.minimumf %201, %202 : vector<1x8xf32>
    %204 = math.absf %201 : vector<1x8xf32>
    %cst_86 = arith.constant 0.000000e+00 : f32
    %205 = vector.broadcast %cst_86 : f32 to vector<1x8xf32>
    %206 = arith.subf %205, %204 : vector<1x8xf32>
    %207 = math.exp %206 : vector<1x8xf32>
    %208 = math.log1p %207 : vector<1x8xf32>
    %209 = arith.subf %203, %208 : vector<1x8xf32>
    %cst_87 = arith.constant 1.250000e-01 : f32
    %210 = vector.broadcast %cst_87 : f32 to vector<1x8xf32>
    %211 = arith.mulf %209, %210 : vector<1x8xf32>
    %212 = arith.addf %194, %211 : vector<1x8xf32>
    %cst_88 = arith.constant 0.000000e+00 : f32
    %213 = vector.broadcast %cst_88 : f32 to vector<1x8xf32>
    %214 = arith.subf %213, %212 : vector<1x8xf32>
    %c0_89 = arith.constant 0 : index
    %c0_90 = arith.constant 0 : index
    %215 = vector.load %arg5[%c0_89, %c0_90] : memref<1x8xf32, #tpu.memory_space<vmem>>, vector<1x8xf32>
    tpu.vector_store %arg5[%c0_89, %c0_90], %214 {strides = array<i32>} : memref<1x8xf32, #tpu.memory_space<vmem>>, vector<1x8xf32>,
    return
  }
  func.func @transform_2(%arg0: i32, %arg1: memref<8xi32, #tpu.memory_space<smem>>, %arg2: memref<96xi32, #tpu.memory_space<smem>>) -> (i32, i32) {
    %c0_i32 = arith.constant 0 : i32
    %c0_i32_0 = arith.constant 0 : i32
    return %c0_i32, %arg0 : i32, i32
  }
}

</mosaic_0001>

<bundles_post_ra>
// kernel: tpu_custom_call.1
= control target key start
LH: loop header
LB: loop body
LE: loop exit
PB: predicated region body
PF: predicated region fallthrough
CT: control target
= control target key end

     0   :  { %s1106_s21 = smov [#allocation6]   ;;  %s1107_s22 = smov [#allocation7]   ;;  %s1577_s0 = inlined_call_operand.hbm [shape: s32[8], index: 0, kind: input, shape index: {}]   ;;  %s1578_s2 = inlined_call_operand.hbm [shape: f32[50,128], index: 2, kind: input, shape index: {}]   ;;  %s1579_s3 = inlined_call_operand.hbm [shape: f32[50,128], index: 3, kind: input, shape index: {}]   ;;  %s1580_s4 = inlined_call_operand.hbm [shape: f32[1,8], index: 4, kind: output, shape index: {}]   ;;  %s1581_s1 = inlined_call_operand.hbm [shape: s32[96], index: 1, kind: input, shape index: {}]  }
   0x1   :  { %s10_s17 = sshll.u32 %s1577_s0, 4  ;;  %s15_s20 = sshll.u32 %s1581_s1, 4  ;;  %s11_s17 = int_to_ptr.hbm [resolvable:$true] %s10_s17  ;;  %s16_s20 = int_to_ptr.hbm [resolvable:$true] %s15_s20 }
   0x2   :  { %13 = dma.hbm_to_smem %s11_s17, 16, %s1106_s21, [#allocation5] }
   0x3   :  { %18 = dma.hbm_to_smem %s16_s20, 16, %s1107_s22, [#allocation5] }
   0x4   :  { %1090 = dma.done.wait [#allocation5], 32 }
   0x5   :  { %1091 = vsyncadd [#allocation5], 4294967264 }
   0x6   :  { %21 = sfence }
   0x7   :  { %22 = vsyncpa [#allocation9], 0  ;;  %s1142_s23 = smov 0  }
   0x8 LB: > { %s31_s0 = sld [smem:[#allocation6 + %s1100_s23]]  ;;  %s33_s1 = scalar_lea.vmem [#allocation2], %s1100_s23  ;;  %s1100_s23 = sphi %s1142_s23, %s29_s23  }
   0x9   : > { %s1149_s24 = sshll.u32 %s33_s1, 4  ;;  %s1152_s25 = smul.u32 12, %s1100_s23  ;;  %s44_s24 = int_to_ptr.vmem [resolvable:$true] %s1149_s24 }
   0xa   : > { %s1159_s27 = scalar_lea.vmem [#allocation3], %s1100_s23  ;;  %s750_s16 = scalar_lea.hbm %s1578_s2, 56 }
   0xb   : > { %s1156_s26 = sld [smem:[#allocation7 + %s1152_s25]]  ;;  %s61_s28 = sshll.u32 %s1159_s27, 4  ;;  %s1162_s28 = int_to_ptr.vmem [resolvable:$true] %s61_s28 }
   0xc   : > { %s65_s29 = sadd.s32 1, %s1152_s25  ;;  %s612_s5 = scalar_lea.vmem %s1159_s27, 8 [#allocation3] }
   0xd   : > { %s1165_s30 = sld [smem:[#allocation7 + %s65_s29]]  ;;  %s1171_s9 = sshll.u32 %s612_s5, 4  ;;  %s80_s9 = int_to_ptr.vmem [resolvable:$true] %s1171_s9 }
   0xe   : > { %s32_s8 = scalar_lea.hbm %s1578_s2, %s31_s0  ;;  %s83_s11 = sadd.s32 2, %s1152_s25 }
   0xf   : > { %s41_s10 = sshll.u32 %s32_s8, 4  ;;  %s42_s10 = int_to_ptr.hbm [resolvable:$true] %s41_s10 }
  0x10   : > { %s746_s12 = sshra.s32 %s42_s10, 4  ;;  %s747_s12 = int_to_ptr.hbm [resolvable:$true] %s746_s12 }
  0x11   : > { %s748_s13 = scalar_lea.hbm %s747_s12, 1  ;;  %p751_p1 = scmp.lt.s32.totalorder %s747_s12, %s1578_s2 }
  0x12   : > { %p749_p0 = scmp.ne.s32.totalorder %s747_s12, %s748_s13  ;;  %p752_p2 = scmp.lt.s32.totalorder %s750_s16, %s748_s13 }
  0x14   : > { %p753_p3 = por %p752_p2, %p751_p1 }
  0x16   : > { %p754_p4 = pnand %p753_p3, %p749_p0 }
  0x18   : > { %757 = shalt.err (!%p754_p4)  }
  0x19   : > { %s758_s19 = sshra.s32 %s44_s24, 4  ;;  %s1108_s21 = smov [#allocation2]   ;;  %s759_s19 = int_to_ptr.vmem [resolvable:$true] %s758_s19 }
  0x1a   : > { %s760_s20 = scalar_lea.vmem %s759_s19, 1  ;;  %s762_s22 = scalar_lea.vmem %s1108_s21, 8 }
  0x1b   : > { %p761_p5 = scmp.ne.s32.totalorder %s759_s19, %s760_s20  ;;  %p763_p6 = scmp.lt.s32.totalorder %s759_s19, [#allocation2] }
  0x1c   : > { %p764_p7 = scmp.lt.s32.totalorder %s762_s22, %s760_s20 }
  0x1e   : > { %p765_p8 = por %p764_p7, %p763_p6 }
  0x20   : > { %p766_p9 = pnand %p765_p8, %p761_p5 }
  0x22   : > { %769 = shalt.err (!%p766_p9)  }
  0x23   : > { %46 = dma.hbm_to_vmem [thread:$0]  %s42_s10, 16, %s44_s24, [#allocation4] }
  0x24   : > { %s49_s29 = scalar_lea.hbm %s1579_s3, %s1156_s26  ;;  %s1189_s5 = sld [smem:[#allocation7 + %s83_s11]] }
  0x25   : > { %s59_s6 = sshll.u32 %s49_s29, 4  ;;  %s67_s12 = scalar_lea.hbm %s1579_s3, %s1165_s30  ;;  %s60_s6 = int_to_ptr.hbm [resolvable:$true] %s59_s6 }
  0x26   : > { %s1195_s13 = sshll.u32 %s67_s12, 4  ;;  %s770_s14 = sshra.s32 %s60_s6, 4  ;;  %s771_s14 = int_to_ptr.hbm [resolvable:$true] %s770_s14  ;;  %s78_s13 = int_to_ptr.hbm [resolvable:$true] %s1195_s13 }
  0x27   : > { %s772_s15 = scalar_lea.hbm %s771_s14, 1  ;;  %s1200_s10 = scalar_lea.hbm %s1579_s3, 56 }
  0x28   : > { %p773_p10 = scmp.ne.s32.totalorder %s771_s14, %s772_s15  ;;  %p775_p11 = scmp.lt.s32.totalorder %s771_s14, %s1579_s3 }
  0x29   : > { %p776_p12 = scmp.lt.s32.totalorder %s1200_s10, %s772_s15 }
  0x2b   : > { %p777_p13 = por %p776_p12, %p775_p11 }
  0x2d   : > { %p778_p0 = pnand %p777_p13, %p773_p10 }
  0x2f   : > { %781 = shalt.err (!%p778_p0)  }
  0x30   : > { %s782_s30 = sshra.s32 %s1162_s28, 4  ;;  %s1109_s18 = smov [#allocation3]   ;;  %s783_s30 = int_to_ptr.vmem [resolvable:$true] %s782_s30 }
  0x31   : > { %s784_s17 = scalar_lea.vmem %s783_s30, 1  ;;  %s1207_s19 = scalar_lea.vmem %s1109_s18, 96 }
  0x32   : > { %p785_p1 = scmp.ne.s32.totalorder %s783_s30, %s784_s17  ;;  %p787_p2 = scmp.lt.s32.totalorder %s783_s30, [#allocation3] }
  0x33   : > { %p788_p3 = scmp.lt.s32.totalorder %s1207_s19, %s784_s17 }
  0x35   : > { %p789_p4 = por %p788_p3, %p787_p2 }
  0x37   : > { %p790_p5 = pnand %p789_p4, %p785_p1 }
  0x39   : > { %793 = shalt.err (!%p790_p5)  }
  0x3a   : > { %64 = dma.hbm_to_vmem [thread:$0]  %s60_s6, 16, %s1162_s28, [#allocation4 + $0x1] }
  0x3b   : > { %s615_s20 = scalar_lea.vmem %s1159_s27, 16 [#allocation3]  ;;  %s794_s21 = sshra.s32 %s78_s13, 4  ;;  %s795_s21 = int_to_ptr.hbm [resolvable:$true] %s794_s21 }
  0x3c   : > { %s796_s22 = scalar_lea.hbm %s795_s21, 1  ;;  %p799_p7 = scmp.lt.s32.totalorder %s795_s21, %s1579_s3 }
  0x3d   : > { %p797_p6 = scmp.ne.s32.totalorder %s795_s21, %s796_s22  ;;  %p800_p8 = scmp.lt.s32.totalorder %s1200_s10, %s796_s22 }
  0x3f   : > { %p801_p9 = por %p800_p8, %p799_p7 }
  0x41   : > { %p802_p10 = pnand %p801_p9, %p797_p6 }
  0x43   : > { %805 = shalt.err (!%p802_p10)  }
  0x44   : > { %s806_s29 = sshra.s32 %s80_s9, 4  ;;  %s807_s29 = int_to_ptr.vmem [resolvable:$true] %s806_s29 }
  0x45   : > { %s808_s28 = scalar_lea.vmem %s807_s29, 1  ;;  %p811_p12 = scmp.lt.s32.totalorder %s807_s29, [#allocation3] }
  0x46   : > { %p809_p11 = scmp.ne.s32.totalorder %s807_s29, %s808_s28  ;;  %p812_p13 = scmp.lt.s32.totalorder %s1207_s19, %s808_s28 }
  0x48   : > { %p813_p0 = por %p812_p13, %p811_p12 }
  0x4a   : > { %p814_p1 = pnand %p813_p0, %p809_p11 }
  0x4c   : > { %817 = shalt.err (!%p814_p1)  }
  0x4d   : > { %82 = dma.hbm_to_vmem [thread:$0]  %s78_s13, 16, %s80_s9, [#allocation4 + $0x1] }
  0x4e   : > { %s85_s8 = scalar_lea.hbm %s1579_s3, %s1189_s5  ;;  %s97_s12 = sshll.u32 %s615_s20, 4  ;;  %s98_s12 = int_to_ptr.vmem [resolvable:$true] %s97_s12 }
  0x4f   : > { %s95_s14 = sshll.u32 %s85_s8, 4  ;;  %s101_s15 = sadd.s32 3, %s1152_s25  ;;  %s96_s14 = int_to_ptr.hbm [resolvable:$true] %s95_s14 }
  0x50   : > { %s818_s16 = sshra.s32 %s96_s14, 4  ;;  %s819_s16 = int_to_ptr.hbm [resolvable:$true] %s818_s16 }
  0x51   : > { %s820_s24 = scalar_lea.hbm %s819_s16, 1  ;;  %p823_p3 = scmp.lt.s32.totalorder %s819_s16, %s1579_s3 }
  0x52   : > { %p821_p2 = scmp.ne.s32.totalorder %s819_s16, %s820_s24  ;;  %p824_p4 = scmp.lt.s32.totalorder %s1200_s10, %s820_s24 }
  0x54   : > { %p825_p5 = por %p824_p4, %p823_p3 }
  0x56   : > { %p826_p6 = pnand %p825_p5, %p821_p2 }
  0x58   : > { %829 = shalt.err (!%p826_p6)  }
  0x59   : > { %s830_s9 = sshra.s32 %s98_s12, 4  ;;  %s831_s9 = int_to_ptr.vmem [resolvable:$true] %s830_s9 }
  0x5a   : > { %s832_s5 = scalar_lea.vmem %s831_s9, 1  ;;  %p835_p8 = scmp.lt.s32.totalorder %s831_s9, [#allocation3] }
  0x5b   : > { %p833_p7 = scmp.ne.s32.totalorder %s831_s9, %s832_s5  ;;  %p836_p9 = scmp.lt.s32.totalorder %s1207_s19, %s832_s5 }
  0x5d   : > { %p837_p10 = por %p836_p9, %p835_p8 }
  0x5f   : > { %p838_p11 = pnand %p837_p10, %p833_p7 }
  0x61   : > { %841 = shalt.err (!%p838_p11)  }
  0x62   : > { %100 = dma.hbm_to_vmem [thread:$0]  %s96_s14, 16, %s98_s12, [#allocation4 + $0x1] }
  0x63   : > { %s102_s13 = sld [smem:[#allocation7 + %s101_s15]]  ;;  %s618_s30 = scalar_lea.vmem %s1159_s27, 24 [#allocation3] }
  0x64   : > { %s1233_s17 = sshll.u32 %s618_s30, 4  ;;  %s119_s18 = sadd.s32 4, %s1152_s25  ;;  %s116_s17 = int_to_ptr.vmem [resolvable:$true] %s1233_s17 }
  0x65   : > { %s1237_s20 = sld [smem:[#allocation7 + %s119_s18]]  ;;  %s621_s21 = scalar_lea.vmem %s1159_s27, 32 [#allocation3] }
  0x66   : > { %s137_s22 = sadd.s32 5, %s1152_s25  ;;  %s1241_s0 = sshll.u32 %s621_s21, 4  ;;  %s134_s0 = int_to_ptr.vmem [resolvable:$true] %s1241_s0 }
  0x67   : > { %s1243_s1 = sld [smem:[#allocation7 + %s137_s22]]  ;;  %s624_s29 = scalar_lea.vmem %s1159_s27, 40 [#allocation3] }
  0x68   : > { %s1250_s8 = sshll.u32 %s624_s29, 4  ;;  %s152_s8 = int_to_ptr.vmem [resolvable:$true] %s1250_s8 }
  0x69   : > { %s103_s7 = scalar_lea.hbm %s1579_s3, %s102_s13 }
  0x6a   : > { %s113_s12 = sshll.u32 %s103_s7, 4  ;;  %s114_s12 = int_to_ptr.hbm [resolvable:$true] %s113_s12 }
  0x6b   : > { %s121_s16 = scalar_lea.hbm %s1579_s3, %s1237_s20  ;;  %s842_s24 = sshra.s32 %s114_s12, 4  ;;  %s843_s24 = int_to_ptr.hbm [resolvable:$true] %s842_s24 }
  0x6c   : > { %s844_s26 = scalar_lea.hbm %s843_s24, 1  ;;  %p847_p13 = scmp.lt.s32.totalorder %s843_s24, %s1579_s3 }
  0x6d   : > { %p845_p12 = scmp.ne.s32.totalorder %s843_s24, %s844_s26  ;;  %p848_p0 = scmp.lt.s32.totalorder %s1200_s10, %s844_s26 }
  0x6f   : > { %p849_p1 = por %p848_p0, %p847_p13 }
  0x71   : > { %p850_p2 = pnand %p849_p1, %p845_p12 }
  0x73   : > { %853 = shalt.err (!%p850_p2)  }
  0x74   : > { %s854_s5 = sshra.s32 %s116_s17, 4  ;;  %s855_s5 = int_to_ptr.vmem [resolvable:$true] %s854_s5 }
  0x75   : > { %s856_s13 = scalar_lea.vmem %s855_s5, 1  ;;  %p859_p4 = scmp.lt.s32.totalorder %s855_s5, [#allocation3] }
  0x76   : > { %p857_p3 = scmp.ne.s32.totalorder %s855_s5, %s856_s13  ;;  %p860_p5 = scmp.lt.s32.totalorder %s1207_s19, %s856_s13 }
  0x78   : > { %p861_p6 = por %p860_p5, %p859_p4 }
  0x7a   : > { %p862_p7 = pnand %p861_p6, %p857_p3 }
  0x7c   : > { %865 = shalt.err (!%p862_p7)  }
  0x7d   : > { %118 = dma.hbm_to_vmem [thread:$0]  %s114_s12, 16, %s116_s17, [#allocation4 + $0x1] }
  0x7e   : > { %s131_s30 = sshll.u32 %s121_s16, 4  ;;  %s139_s21 = scalar_lea.hbm %s1579_s3, %s1243_s1  ;;  %s132_s30 = int_to_ptr.hbm [resolvable:$true] %s131_s30 }
  0x7f   : > { %s1270_s22 = sshll.u32 %s139_s21, 4  ;;  %s866_s29 = sshra.s32 %s132_s30, 4  ;;  %s867_s29 = int_to_ptr.hbm [resolvable:$true] %s866_s29  ;;  %s150_s22 = int_to_ptr.hbm [resolvable:$true] %s1270_s22 }
  0x80   : > { %s868_s28 = scalar_lea.hbm %s867_s29, 1  ;;  %p871_p9 = scmp.lt.s32.totalorder %s867_s29, %s1579_s3 }
  0x81   : > { %p869_p8 = scmp.ne.s32.totalorder %s867_s29, %s868_s28  ;;  %p872_p10 = scmp.lt.s32.totalorder %s1200_s10, %s868_s28 }
  0x83   : > { %p873_p11 = por %p872_p10, %p871_p9 }
  0x85   : > { %p874_p12 = pnand %p873_p11, %p869_p8 }
  0x87   : > { %877 = shalt.err (!%p874_p12)  }
  0x88   : > { %s878_s17 = sshra.s32 %s134_s0, 4  ;;  %s879_s17 = int_to_ptr.vmem [resolvable:$true] %s878_s17 }
  0x89   : > { %s880_s1 = scalar_lea.vmem %s879_s17, 1  ;;  %p883_p0 = scmp.lt.s32.totalorder %s879_s17, [#allocation3] }
  0x8a   : > { %p881_p13 = scmp.ne.s32.totalorder %s879_s17, %s880_s1  ;;  %p884_p1 = scmp.lt.s32.totalorder %s1207_s19, %s880_s1 }
  0x8c   : > { %p885_p2 = por %p884_p1, %p883_p0 }
  0x8e   : > { %p886_p3 = pnand %p885_p2, %p881_p13 }
  0x90   : > { %889 = shalt.err (!%p886_p3)  }
  0x91   : > { %136 = dma.hbm_to_vmem [thread:$0]  %s132_s30, 16, %s134_s0, [#allocation4 + $0x1] }
  0x92   : > { %s155_s12 = sadd.s32 6, %s1152_s25  ;;  %s890_s14 = sshra.s32 %s150_s22, 4  ;;  %s891_s14 = int_to_ptr.hbm [resolvable:$true] %s890_s14 }
  0x93   : > { %s892_s15 = scalar_lea.hbm %s891_s14, 1  ;;  %p895_p5 = scmp.lt.s32.totalorder %s891_s14, %s1579_s3 }
  0x94   : > { %p893_p4 = scmp.ne.s32.totalorder %s891_s14, %s892_s15  ;;  %p896_p6 = scmp.lt.s32.totalorder %s1200_s10, %s892_s15 }
  0x96   : > { %p897_p7 = por %p896_p6, %p895_p5 }
  0x98   : > { %p898_p8 = pnand %p897_p7, %p893_p4 }
  0x9a   : > { %901 = shalt.err (!%p898_p8)  }
  0x9b   : > { %s902_s26 = sshra.s32 %s152_s8, 4  ;;  %s903_s26 = int_to_ptr.vmem [resolvable:$true] %s902_s26 }
  0x9c   : > { %s904_s0 = scalar_lea.vmem %s903_s26, 1  ;;  %p907_p10 = scmp.lt.s32.totalorder %s903_s26, [#allocation3] }
  0x9d   : > { %p905_p9 = scmp.ne.s32.totalorder %s903_s26, %s904_s0  ;;  %p908_p11 = scmp.lt.s32.totalorder %s1207_s19, %s904_s0 }
  0x9f   : > { %p909_p12 = por %p908_p11, %p907_p10 }
  0xa1   : > { %p910_p13 = pnand %p909_p12, %p905_p9 }
  0xa3   : > { %913 = shalt.err (!%p910_p13)  }
  0xa4   : > { %154 = dma.hbm_to_vmem [thread:$0]  %s150_s22, 16, %s152_s8, [#allocation4 + $0x1] }
  0xa5   : > { %s156_s11 = sld [smem:[#allocation7 + %s155_s12]]  ;;  %s627_s9 = scalar_lea.vmem %s1159_s27, 48 [#allocation3] }
  0xa6   : > { %s1293_s5 = sshll.u32 %s627_s9, 4  ;;  %s173_s13 = sadd.s32 7, %s1152_s25  ;;  %s170_s5 = int_to_ptr.vmem [resolvable:$true] %s1293_s5 }
  0xa7   : > { %s1297_s30 = sld [smem:[#allocation7 + %s173_s13]]  ;;  %s630_s18 = scalar_lea.vmem %s1159_s27, 56 [#allocation3] }
  0xa8   : > { %s191_s20 = sadd.s32 8, %s1152_s25  ;;  %s1301_s21 = sshll.u32 %s630_s18, 4  ;;  %s188_s21 = int_to_ptr.vmem [resolvable:$true] %s1301_s21 }
  0xa9   : > { %s1303_s29 = sld [smem:[#allocation7 + %s191_s20]]  ;;  %s633_s8 = scalar_lea.vmem %s1159_s27, 64 [#allocation3] }
  0xaa   : > { %s1310_s7 = sshll.u32 %s633_s8, 4  ;;  %s206_s7 = int_to_ptr.vmem [resolvable:$true] %s1310_s7 }
  0xab   : > { %s157_s6 = scalar_lea.hbm %s1579_s3, %s156_s11 }
  0xac   : > { %s167_s17 = sshll.u32 %s157_s6, 4  ;;  %s168_s17 = int_to_ptr.hbm [resolvable:$true] %s167_s17 }
  0xad   : > { %s175_s14 = scalar_lea.hbm %s1579_s3, %s1297_s30  ;;  %s914_s15 = sshra.s32 %s168_s17, 4  ;;  %s915_s15 = int_to_ptr.hbm [resolvable:$true] %s914_s15 }
  0xae   : > { %s916_s16 = scalar_lea.hbm %s915_s15, 1  ;;  %p919_p1 = scmp.lt.s32.totalorder %s915_s15, %s1579_s3 }
  0xaf   : > { %p917_p0 = scmp.ne.s32.totalorder %s915_s15, %s916_s16  ;;  %p920_p2 = scmp.lt.s32.totalorder %s1200_s10, %s916_s16 }
  0xb1   : > { %p921_p3 = por %p920_p2, %p919_p1 }
  0xb3   : > { %p922_p4 = pnand %p921_p3, %p917_p0 }
  0xb5   : > { %925 = shalt.err (!%p922_p4)  }
  0xb6   : > { %s926_s0 = sshra.s32 %s170_s5, 4  ;;  %s927_s0 = int_to_ptr.vmem [resolvable:$true] %s926_s0 }
  0xb7   : > { %s928_s11 = scalar_lea.vmem %s927_s0, 1  ;;  %p931_p6 = scmp.lt.s32.totalorder %s927_s0, [#allocation3] }
  0xb8   : > { %p929_p5 = scmp.ne.s32.totalorder %s927_s0, %s928_s11  ;;  %p932_p7 = scmp.lt.s32.totalorder %s1207_s19, %s928_s11 }
  0xba   : > { %p933_p8 = por %p932_p7, %p931_p6 }
  0xbc   : > { %p934_p9 = pnand %p933_p8, %p929_p5 }
  0xbe   : > { %937 = shalt.err (!%p934_p9)  }
  0xbf   : > { %172 = dma.hbm_to_vmem [thread:$0]  %s168_s17, 16, %s170_s5, [#allocation4 + $0x1] }
  0xc0   : > { %s185_s9 = sshll.u32 %s175_s14, 4  ;;  %s193_s18 = scalar_lea.hbm %s1579_s3, %s1303_s29  ;;  %s186_s9 = int_to_ptr.hbm [resolvable:$true] %s185_s9 }
  0xc1   : > { %s1330_s20 = sshll.u32 %s193_s18, 4  ;;  %s938_s8 = sshra.s32 %s186_s9, 4  ;;  %s939_s8 = int_to_ptr.hbm [resolvable:$true] %s938_s8  ;;  %s204_s20 = int_to_ptr.hbm [resolvable:$true] %s1330_s20 }
  0xc2   : > { %s940_s22 = scalar_lea.hbm %s939_s8, 1  ;;  %p943_p11 = scmp.lt.s32.totalorder %s939_s8, %s1579_s3 }
  0xc3   : > { %p941_p10 = scmp.ne.s32.totalorder %s939_s8, %s940_s22  ;;  %p944_p12 = scmp.lt.s32.totalorder %s1200_s10, %s940_s22 }
  0xc5   : > { %p945_p13 = por %p944_p12, %p943_p11 }
  0xc7   : > { %p946_p0 = pnand %p945_p13, %p941_p10 }
  0xc9   : > { %949 = shalt.err (!%p946_p0)  }
  0xca   : > { %s950_s5 = sshra.s32 %s188_s21, 4  ;;  %s951_s5 = int_to_ptr.vmem [resolvable:$true] %s950_s5 }
  0xcb   : > { %s952_s29 = scalar_lea.vmem %s951_s5, 1  ;;  %p955_p2 = scmp.lt.s32.totalorder %s951_s5, [#allocation3] }
  0xcc   : > { %p953_p1 = scmp.ne.s32.totalorder %s951_s5, %s952_s29  ;;  %p956_p3 = scmp.lt.s32.totalorder %s1207_s19, %s952_s29 }
  0xce   : > { %p957_p4 = por %p956_p3, %p955_p2 }
  0xd0   : > { %p958_p5 = pnand %p957_p4, %p953_p1 }
  0xd2   : > { %961 = shalt.err (!%p958_p5)  }
  0xd3   : > { %190 = dma.hbm_to_vmem [thread:$0]  %s186_s9, 16, %s188_s21, [#allocation4 + $0x1] }
  0xd4   : > { %s209_s17 = sadd.s32 9, %s1152_s25  ;;  %s962_s1 = sshra.s32 %s204_s20, 4  ;;  %s963_s1 = int_to_ptr.hbm [resolvable:$true] %s962_s1 }
  0xd5   : > { %s964_s12 = scalar_lea.hbm %s963_s1, 1  ;;  %p967_p7 = scmp.lt.s32.totalorder %s963_s1, %s1579_s3 }
  0xd6   : > { %p965_p6 = scmp.ne.s32.totalorder %s963_s1, %s964_s12  ;;  %p968_p8 = scmp.lt.s32.totalorder %s1200_s10, %s964_s12 }
  0xd8   : > { %p969_p9 = por %p968_p8, %p967_p7 }
  0xda   : > { %p970_p10 = pnand %p969_p9, %p965_p6 }
  0xdc   : > { %973 = shalt.err (!%p970_p10)  }
  0xdd   : > { %s974_s16 = sshra.s32 %s206_s7, 4  ;;  %s975_s16 = int_to_ptr.vmem [resolvable:$true] %s974_s16 }
  0xde   : > { %s976_s21 = scalar_lea.vmem %s975_s16, 1  ;;  %p979_p12 = scmp.lt.s32.totalorder %s975_s16, [#allocation3] }
  0xdf   : > { %p977_p11 = scmp.ne.s32.totalorder %s975_s16, %s976_s21  ;;  %p980_p13 = scmp.lt.s32.totalorder %s1207_s19, %s976_s21 }
  0xe1   : > { %p981_p0 = por %p980_p13, %p979_p12 }
  0xe3   : > { %p982_p1 = pnand %p981_p0, %p977_p11 }
  0xe5   : > { %985 = shalt.err (!%p982_p1)  }
  0xe6   : > { %208 = dma.hbm_to_vmem [thread:$0]  %s204_s20, 16, %s206_s7, [#allocation4 + $0x1] }
  0xe7   : > { %s210_s24 = sld [smem:[#allocation7 + %s209_s17]]  ;;  %s636_s26 = scalar_lea.vmem %s1159_s27, 72 [#allocation3] }
  0xe8   : > { %s1353_s0 = sshll.u32 %s636_s26, 4  ;;  %s227_s11 = sadd.s32 10, %s1152_s25  ;;  %s224_s0 = int_to_ptr.vmem [resolvable:$true] %s1353_s0 }
  0xe9   : > { %s1357_s9 = sld [smem:[#allocation7 + %s227_s11]]  ;;  %s639_s13 = scalar_lea.vmem %s1159_s27, 80 [#allocation3] }
  0xea   : > { %s245_s30 = sadd.s32 11, %s1152_s25  ;;  %s1361_s18 = sshll.u32 %s639_s13, 4  ;;  %s242_s18 = int_to_ptr.vmem [resolvable:$true] %s1361_s18 }
  0xeb   : > { %s1363_s8 = sld [smem:[#allocation7 + %s245_s30]]  ;;  %s642_s7 = scalar_lea.vmem %s1159_s27, 88 [#allocation3] }
  0xec   : > { %s1370_s6 = sshll.u32 %s642_s7, 4  ;;  %s260_s6 = int_to_ptr.vmem [resolvable:$true] %s1370_s6 }
  0xed   : > { %s211_s28 = scalar_lea.hbm %s1579_s3, %s210_s24 }
  0xee   : > { %s221_s5 = sshll.u32 %s211_s28, 4  ;;  %s222_s5 = int_to_ptr.hbm [resolvable:$true] %s221_s5 }
  0xef   : > { %s229_s17 = scalar_lea.hbm %s1579_s3, %s1357_s9  ;;  %s986_s1 = sshra.s32 %s222_s5, 4  ;;  %s987_s1 = int_to_ptr.hbm [resolvable:$true] %s986_s1 }
  0xf0   : > { %s988_s12 = scalar_lea.hbm %s987_s1, 1  ;;  %p991_p3 = scmp.lt.s32.totalorder %s987_s1, %s1579_s3 }
  0xf1   : > { %p989_p2 = scmp.ne.s32.totalorder %s987_s1, %s988_s12  ;;  %p992_p4 = scmp.lt.s32.totalorder %s1200_s10, %s988_s12 }
  0xf3   : > { %p993_p5 = por %p992_p4, %p991_p3 }
  0xf5   : > { %p994_p6 = pnand %p993_p5, %p989_p2 }
  0xf7   : > { %997 = shalt.err (!%p994_p6)  }
  0xf8   : > { %s998_s15 = sshra.s32 %s224_s0, 4  ;;  %s999_s15 = int_to_ptr.vmem [resolvable:$true] %s998_s15 }
  0xf9   : > { %s1000_s16 = scalar_lea.vmem %s999_s15, 1  ;;  %p1003_p8 = scmp.lt.s32.totalorder %s999_s15, [#allocation3] }
  0xfa   : > { %p1001_p7 = scmp.ne.s32.totalorder %s999_s15, %s1000_s16  ;;  %p1004_p9 = scmp.lt.s32.totalorder %s1207_s19, %s1000_s16 }
  0xfc   : > { %p1005_p10 = por %p1004_p9, %p1003_p8 }
  0xfe   : > { %p1006_p11 = pnand %p1005_p10, %p1001_p7 }
 0x100   : > { %1009 = shalt.err (!%p1006_p11)  }
 0x101   : > { %226 = dma.hbm_to_vmem [thread:$0]  %s222_s5, 16, %s224_s0, [#allocation4 + $0x1] }
 0x102   : > { %s239_s21 = sshll.u32 %s229_s17, 4  ;;  %s247_s11 = scalar_lea.hbm %s1579_s3, %s1363_s8  ;;  %s240_s21 = int_to_ptr.hbm [resolvable:$true] %s239_s21 }
 0x103   : > { %s1390_s9 = sshll.u32 %s247_s11, 4  ;;  %s1010_s13 = sshra.s32 %s240_s21, 4  ;;  %s1011_s13 = int_to_ptr.hbm [resolvable:$true] %s1010_s13  ;;  %s258_s9 = int_to_ptr.hbm [resolvable:$true] %s1390_s9 }
 0x104   : > { %s1012_s30 = scalar_lea.hbm %s1011_s13, 1  ;;  %p1015_p13 = scmp.lt.s32.totalorder %s1011_s13, %s1579_s3 }
 0x105   : > { %p1013_p12 = scmp.ne.s32.totalorder %s1011_s13, %s1012_s30  ;;  %p1016_p0 = scmp.lt.s32.totalorder %s1200_s10, %s1012_s30 }
 0x107   : > { %p1017_p1 = por %p1016_p0, %p1015_p13 }
 0x109   : > { %p1018_p2 = pnand %p1017_p1, %p1013_p12 }
 0x10b   : > { %1021 = shalt.err (!%p1018_p2)  }
 0x10c   : > { %s1022_s0 = sshra.s32 %s242_s18, 4  ;;  %s1023_s0 = int_to_ptr.vmem [resolvable:$true] %s1022_s0 }
 0x10d   : > { %s1024_s8 = scalar_lea.vmem %s1023_s0, 1  ;;  %p1027_p4 = scmp.lt.s32.totalorder %s1023_s0, [#allocation3] }
 0x10e   : > { %p1025_p3 = scmp.ne.s32.totalorder %s1023_s0, %s1024_s8  ;;  %p1028_p5 = scmp.lt.s32.totalorder %s1207_s19, %s1024_s8 }
 0x110   : > { %p1029_p6 = por %p1028_p5, %p1027_p4 }
 0x112   : > { %p1030_p7 = pnand %p1029_p6, %p1025_p3 }
 0x114   : > { %1033 = shalt.err (!%p1030_p7)  }
 0x115   : > { %244 = dma.hbm_to_vmem [thread:$0]  %s240_s21, 16, %s242_s18, [#allocation4 + $0x1] }
 0x116   : > { %s1034_s22 = sshra.s32 %s258_s9, 4  ;;  %s1035_s22 = int_to_ptr.hbm [resolvable:$true] %s1034_s22 }
 0x117   : > { %s1036_s28 = scalar_lea.hbm %s1035_s22, 1  ;;  %p1039_p9 = scmp.lt.s32.totalorder %s1035_s22, %s1579_s3 }
 0x118   : > { %p1037_p8 = scmp.ne.s32.totalorder %s1035_s22, %s1036_s28  ;;  %p1040_p10 = scmp.lt.s32.totalorder %s1200_s10, %s1036_s28 }
 0x11a   : > { %p1041_p11 = por %p1040_p10, %p1039_p9 }
 0x11c   : > { %p1042_p12 = pnand %p1041_p11, %p1037_p8 }
 0x11e   : > { %1045 = shalt.err (!%p1042_p12)  }
 0x11f   : > { %s1046_s25 = sshra.s32 %s260_s6, 4  ;;  %s1047_s25 = int_to_ptr.vmem [resolvable:$true] %s1046_s25 }
 0x120   : > { %s1048_s17 = scalar_lea.vmem %s1047_s25, 1  ;;  %p1051_p0 = scmp.lt.s32.totalorder %s1047_s25, [#allocation3] }
 0x121   : > { %p1049_p13 = scmp.ne.s32.totalorder %s1047_s25, %s1048_s17  ;;  %p1052_p1 = scmp.lt.s32.totalorder %s1207_s19, %s1048_s17 }
 0x123   : > { %p1053_p2 = por %p1052_p1, %p1051_p0 }
 0x125   : > { %p1054_p3 = pnand %p1053_p2, %p1049_p13 }
 0x127   : > { %1057 = shalt.err (!%p1054_p3)  }
 0x128   : > { %262 = dma.hbm_to_vmem [thread:$0]  %s258_s9, 16, %s260_s6, [#allocation4 + $0x1] }
 0x129   : > { %s29_s23 = sadd.s32 1, %s1100_s23  }
 0x12a   : > { %p26_p4 = scmp.ge.s32.totalorder %s29_s23, 8  }
 0x12b   :  { %s1102_s10 = smov (%p26_p4), 0  }
 0x12c   :  { %28 = sbr.rel (!%p26_p4) target bundleno = 8 (0x8), region = 126 }
 0x131 LB: > { %1092 = dma.done.wait [#allocation4], 16  ;;  %s1104_s10 = sphi %s1102_s10, %s268_s10  }
 0x132   : > { %1093 = vsyncadd [#allocation4], 4294967280 }
 0x133   : > { %1094 = dma.done.wait [#allocation4 + $0x1], 192 }
 0x134   : > { %1095 = vsyncadd [#allocation4 + $0x1], 4294967104  ;;  %s268_s10 = sadd.s32 1, %s1104_s10  }
 0x135   : > { %p265_p5 = scmp.ge.s32.totalorder %s268_s10, 8  }
 0x136   :  { %v297_v0 = vld [vmem:[#allocation2] sm:$0xff] (%p265_p5)  ;;  %v386_v1 = vld [vmem:[#allocation3 + $0x20] sm:$0xff] (%p265_p5)  ;;  %v342_v2 = vld [vmem:[#allocation3 + $0x10] sm:$0xff] (%p265_p5)  ;;  %s1110_s2 = smov (%p265_p5), [#allocation8]   ;;  %s584_s18 = sshll.u32 (%p265_p5), %s1580_s4, 4  ;;  %vm575_vm12 = vcmask (%p265_p5), 57344   ;;  %s585_s18 = int_to_ptr.hbm [resolvable:$true] %s584_s18 }
 0x137   :  { %267 = sbr.rel (!%p265_p5) target bundleno = 305 (0x131), region = 137  ;;  %v387_v3 = vmul.f32 (%p265_p5), %v386_v1, %v297_v0  ;;  %v343_v4 = vmul.f32 (%p265_p5), %v342_v2, %v297_v0  ;;  %v298_v5 = vld [vmem:[#allocation3] sm:$0xff] (%p265_p5)  ;;  %v409_v7 = vld [vmem:[#allocation3 + $0x28] sm:$0xff] (%p265_p5)  ;;  %v364_v8 = vld [vmem:[#allocation3 + $0x18] sm:$0xff] (%p265_p5)  ;;  %s582_s3 = sshll.u32 (%p265_p5), %s1110_s2, 4  ;;  %s583_s3 = int_to_ptr.vmem [resolvable:$true] %s582_s3 }
 0x138   :  { %v299_v6 = vmul.f32 (%p265_p5), %v298_v5, %v297_v0  ;;  %v320_v9 = vld [vmem:[#allocation3 + $0x8] sm:$0xff] (%p265_p5)  ;;  %v410_v10 = vmul.f32 (%p265_p5), %v409_v7, %v297_v0  ;;  %v365_v11 = vmul.f32 (%p265_p5), %v364_v8, %v297_v0  ;;  %v478_v13 = vld [vmem:[#allocation3 + $0x40] sm:$0xff] (%p265_p5)  ;;  %v455_v14 = vld [vmem:[#allocation3 + $0x38] sm:$0xff] (%p265_p5) }
 0x139   :  { %388 = vadd.xlane.f32.xlu2 (%p265_p5), %v387_v3  ;;  %344 = vadd.xlane.f32.xlu1 (%p265_p5), %v343_v4  ;;  %v321_v12 = vmul.f32 (%p265_p5), %v320_v9, %v297_v0  ;;  %v432_v15 = vld [vmem:[#allocation3 + $0x30] sm:$0xff] (%p265_p5)  ;;  %v479_v16 = vmul.f32 (%p265_p5), %v478_v13, %v297_v0  ;;  %v456_v17 = vmul.f32 (%p265_p5), %v455_v14, %v297_v0  ;;  %v547_v19 = vld [vmem:[#allocation3 + $0x58] sm:$0xff] (%p265_p5)  ;;  %v501_v21 = vld [vmem:[#allocation3 + $0x48] sm:$0xff] (%p265_p5) }
 0x13a   :  { %300 = vadd.xlane.f32.xlu0 (%p265_p5), %v299_v6  ;;  %v433_v18 = vmul.f32 (%p265_p5), %v432_v15, %v297_v0  ;;  %v524_v20 = vld [vmem:[#allocation3 + $0x50] sm:$0xff] (%p265_p5)  ;;  %v548_v22 = vmul.f32 (%p265_p5), %v547_v19, %v297_v0  ;;  %v502_v24 = vmul.f32 (%p265_p5), %v501_v21, %v297_v0 }
 0x13b   :  { %v525_v23 = vmul.f32 (%p265_p5), %v524_v20, %v297_v0 }
 0x141   :  { %411 = vadd.xlane.f32.xlu2 %v410_v10  ;;  %366 = vadd.xlane.f32.xlu1 %v365_v11 }
 0x142   :  { %322 = vadd.xlane.f32.xlu0 %v321_v12 }
 0x149   :  { %480 = vadd.xlane.f32.xlu2 %v479_v16  ;;  %457 = vadd.xlane.f32.xlu1 %v456_v17 }
 0x14a   :  { %434 = vadd.xlane.f32.xlu0 %v433_v18 }
 0x151   :  { %549 = vadd.xlane.f32.xlu2 %v548_v22  ;;  %526 = vadd.xlane.f32.xlu1 %v525_v23 }
 0x152   :  { %503 = vadd.xlane.f32.xlu0 %v502_v24 }
 0x1ac   :  { %v389_v25 = vpop.xlane.xlu2 %388  ;;  %v1414_v26 = vpop.xlane.xlu1 %344 }
 0x1ad   :  { %v390_v27 = vsub.f32 0.0, %v389_v25  ;;  %v347_v28 = vand.u32 2147483647, %v1414_v26  ;;  %v1417_v29 = vpop.xlane.xlu0 %300  ;;  %v346_v2 = vmin.f32 %v1414_v26, 0.0 }
 0x1ae   :  { %v303_v30 = vand.u32 2147483647, %v1417_v29  ;;  %v302_v7 = vmin.f32 %v1417_v29, 0.0 }
 0x1af   :  { %v392_v31 = vand.u32 2147483647, %v390_v27  ;;  %v348_v32 = vsub.f32 0.0, %v347_v28  ;;  %v1459_v5 = vmin.f32 %v390_v27, 0.0 }
 0x1b0   :  { %v304_v33 = vsub.f32 0.0, %v303_v30 }
 0x1b1   :  { %v349_v34 = vmul.f32 1.442695, %v348_v32  ;;  %v393_v36 = vsub.f32 0.0, %v392_v31 }
 0x1b2   :  { %v305_v35 = vmul.f32 1.442695, %v304_v33 }
 0x1b3   :  { %674 = vpow2.f32 %v349_v34  ;;  %v394_v43 = vmul.f32 1.442695, %v393_v36 }
 0x1b4   :  { %v1420_v37 = vpop.xlane.xlu2 %411  ;;  %v1422_v38 = vpop.xlane.xlu1 %366  ;;  %676 = vpow2.f32 %v305_v35 }
 0x1b5   :  { %v413_v39 = vsub.f32 0.0, %v1420_v37  ;;  %v369_v40 = vand.u32 2147483647, %v1422_v38  ;;  %v1426_v41 = vpop.xlane.xlu0 %322  ;;  %678 = vpow2.f32 %v394_v43  ;;  %v368_v11 = vmin.f32 %v1422_v38, 0.0 }
 0x1b6   :  { %v325_v42 = vand.u32 2147483647, %v1426_v41  ;;  %v324_v16 = vmin.f32 %v1426_v41, 0.0 }
 0x1b7   :  { %v415_v44 = vand.u32 2147483647, %v413_v39  ;;  %v370_v45 = vsub.f32 0.0, %v369_v40 }
 0x1b8   :  { %v326_v46 = vsub.f32 0.0, %v325_v42 }
 0x1b9   :  { %v1431_v47 = vpop.eup %674  ;;  %v416_v49 = vsub.f32 0.0, %v415_v44  ;;  %v371_v50 = vmul.f32 1.442695, %v370_v45 }
 0x1ba   :  { %v1433_v48 = vpop.eup %676  ;;  %v327_v52 = vmul.f32 1.442695, %v326_v46  ;;  %v351_v55 = vadd.f32 1.0, %v1431_v47  ;;  %v354_v3 = vmul.f32 -0.5, %v1431_v47  ;;  %v357_v6 = vand.u32 2147483647, %v1431_v47 }
 0x1bb   :  { %v307_v56 = vadd.f32 1.0, %v1433_v48  ;;  %v417_v58 = vmul.f32 1.442695, %v416_v49  ;;  %680 = vpow2.f32 %v371_v50  ;;  %v1446_v61 = vpop.eup %678  ;;  %v310_v8 = vmul.f32 -0.5, %v1433_v48 }
 0x1bc   :  { %v1435_v51 = vpop.xlane.xlu2 %480  ;;  %v1437_v53 = vpop.xlane.xlu1 %457  ;;  %682 = vpow2.f32 %v327_v52  ;;  %v396_v63 = vadd.f32 1.0, %v1446_v61  ;;  %v399_v10 = vmul.f32 -0.5, %v1446_v61  ;;  %v402_v20 = vand.u32 2147483647, %v1446_v61 }
 0x1bd   :  { %v1439_v54 = vpop.xlane.xlu0 %434  ;;  %v482_v57 = vsub.f32 0.0, %v1435_v51  ;;  %v459_v59 = vsub.f32 0.0, %v1437_v53  ;;  %684 = vlog2.f32 %v351_v55  ;;  %v355_v21 = vadd.f32 1.0, %v354_v3 }
 0x1be   :  { %v436_v60 = vsub.f32 0.0, %v1439_v54  ;;  %686 = vlog2.f32 %v307_v56  ;;  %v313_v22 = vand.u32 2147483647, %v1433_v48  ;;  %vm1476_vm0 = vcmp.lt.f32.partialorder %v357_v6, 0.0004427343 }
 0x1bf   :  { %v484_v62 = vand.u32 2147483647, %v482_v57  ;;  %688 = vpow2.f32 %v417_v58  ;;  %v461_v0 = vand.u32 2147483647, %v459_v59  ;;  %v311_v25 = vadd.f32 1.0, %v310_v8 }
 0x1c0   :  { %v438_v1 = vand.u32 2147483647, %v436_v60  ;;  %690 = vlog2.f32 %v396_v63  ;;  %v400_v30 = vadd.f32 1.0, %v399_v10  ;;  %vm1486_vm1 = vcmp.lt.f32.partialorder %v402_v20, 0.0004427343 }
 0x1c1   :  { %v1457_v4 = vpop.eup %680  ;;  %v485_v13 = vsub.f32 0.0, %v484_v62  ;;  %v462_v17 = vsub.f32 0.0, %v461_v0  ;;  %v356_v43 = vmul.f32 %v1431_v47, %v355_v21  ;;  %vm1492_vm2 = vcmp.lt.f32.partialorder %v313_v22, 0.0004427343 }
 0x1c2   :  { %v1464_v9 = vpop.eup %682  ;;  %v373_v12 = vadd.f32 1.0, %v1457_v4  ;;  %v439_v18 = vsub.f32 0.0, %v438_v1  ;;  %v376_v35 = vmul.f32 -0.5, %v1457_v4  ;;  %v312_v47 = vmul.f32 %v1433_v48, %v311_v25 }
 0x1c3   :  { %v685_v15 = vpop.eup %684  ;;  %v329_v27 = vadd.f32 1.0, %v1464_v9  ;;  %v332_v32 = vmul.f32 -0.5, %v1464_v9  ;;  %v486_v33 = vmul.f32 1.442695, %v485_v13  ;;  %v463_v36 = vmul.f32 1.442695, %v462_v17 }
 0x1c4   :  { %v1469_v14 = vpop.xlane.xlu2 %549  ;;  %v687_v19 = vpop.eup %686  ;;  %692 = vlog2.f32 %v373_v12  ;;  %v353_v31 = vmul.f32 0.6931472, %v685_v15  ;;  %v440_v40 = vmul.f32 1.442695, %v439_v18  ;;  %v377_v63 = vadd.f32 1.0, %v376_v35 }
 0x1c5   :  { %v1474_v23 = vpop.eup %688  ;;  %v551_v28 = vsub.f32 0.0, %v1469_v14  ;;  %v1483_v34 = vpop.xlane.xlu1 %526  ;;  %694 = vlog2.f32 %v329_v27  ;;  %v309_v44 = vmul.f32 0.6931472, %v687_v19  ;;  %v333_v58 = vadd.f32 1.0, %v332_v32 }
 0x1c6   :  { %v419_v45 = vadd.f32 1.0, %v1474_v23  ;;  %v691_v46 = vpop.eup %690  ;;  %696 = vpow2.f32 %v463_v36  ;;  %v528_v52 = vsub.f32 0.0, %v1483_v34  ;;  %v359_v56 = vsel %vm1476_vm0, %v356_v43, %v353_v31  ;;  %v1502_v62 = vpop.xlane.xlu0 %503 }
 0x1c7   :  { %v553_v50 = vand.u32 2147483647, %v551_v28  ;;  %698 = vpow2.f32 %v440_v40  ;;  %v335_v0 = vand.u32 2147483647, %v1464_v9  ;;  %v315_v3 = vsel %vm1492_vm2, %v312_v47, %v309_v44 }
 0x1c8   :  { %700 = vpow2.f32 %v486_v33  ;;  %v379_v6 = vand.u32 2147483647, %v1457_v4  ;;  %v530_v8 = vand.u32 2147483647, %v528_v52  ;;  %v398_v48 = vmul.f32 0.6931472, %v691_v46 }
 0x1c9   :  { %v554_v1 = vsub.f32 0.0, %v553_v50  ;;  %702 = vlog2.f32 %v419_v45  ;;  %v401_v12 = vmul.f32 %v1446_v61, %v400_v30  ;;  %v505_v15 = vsub.f32 0.0, %v1502_v62 }
 0x1ca   :  { %v693_v55 = vpop.eup %692  ;;  %v360_v17 = vsub.f32 %v346_v2, %v359_v56  ;;  %v422_v18 = vmul.f32 -0.5, %v1474_v23  ;;  %v334_v20 = vmul.f32 %v1464_v9, %v333_v58  ;;  %v316_v22 = vsub.f32 %v302_v7, %v315_v3 }
 0x1cb   :  { %v695_v10 = vpop.eup %694  ;;  %v375_v13 = vmul.f32 0.6931472, %v693_v55  ;;  %v378_v24 = vmul.f32 %v1457_v4, %v377_v63  ;;  %vm336_vm3 = vcmp.lt.f32.partialorder %v335_v0, 0.0004427343  ;;  %v555_v61 = vmul.f32 1.442695, %v554_v1 }
 0x1cc   :  { %v331_v19 = vmul.f32 0.6931472, %v695_v10  ;;  %v1516_v21 = vpop.eup %696  ;;  %vm1521_vm4 = vcmp.lt.f32.partialorder %v379_v6, 0.0004427343  ;;  %v531_v30 = vsub.f32 0.0, %v530_v8  ;;  %v404_v9 = vsel %vm1486_vm1, %v401_v12, %v398_v48 }
 0x1cd   :  { %v699_v25 = vpop.eup %698  ;;  %v465_v2 = vadd.f32 1.0, %v1516_v21  ;;  %v381_v29 = vsel %vm1521_vm4, %v378_v24, %v375_v13  ;;  %v507_v7 = vand.u32 2147483647, %v505_v15  ;;  %v423_v33 = vadd.f32 1.0, %v422_v18 }
 0x1ce   :  { %v337_v26 = vsel %vm336_vm3, %v334_v20, %v331_v19  ;;  %v1526_v31 = vpop.eup %700  ;;  %v425_v35 = vand.u32 2147483647, %v1474_v23  ;;  %v442_v36 = vadd.f32 1.0, %v699_v25  ;;  %v317_v40 = vmul.f32 0.25, %v316_v22 }
 0x1cf   :  { %v338_v4 = vsub.f32 %v324_v16, %v337_v26  ;;  %v703_v32 = vpop.eup %702  ;;  %704 = vlog2.f32 %v465_v2  ;;  %v445_v44 = vmul.f32 -0.5, %v699_v25  ;;  %v382_v42 = vsub.f32 %v368_v11, %v381_v29 }
 0x1d0   :  { %706 = vpow2.f32 %v555_v61  ;;  %v488_v45 = vadd.f32 1.0, %v1526_v31  ;;  %v532_v41 = vmul.f32 1.442695, %v531_v30  ;;  %v361_v16 = vmul.f32 0.25, %v360_v17 }
 0x1d1   :  { %v339_v43 = vmul.f32 0.25, %v338_v4  ;;  %708 = vlog2.f32 %v442_v36  ;;  %v421_v46 = vmul.f32 0.6931472, %v703_v32  ;;  %v508_v50 = vsub.f32 0.0, %v507_v7 }
 0x1d2   :  { %v405_v55 = vsub.f32 %v1459_v5, %v404_v9  ;;  %v424_v56 = vmul.f32 %v1474_v23, %v423_v33  ;;  %710 = vpow2.f32 %v532_v41  ;;  %v468_v58 = vmul.f32 -0.5, %v1516_v21 }
 0x1d3   :  { %v340_v49 = vadd.f32 %v339_v43, %v317_v40  ;;  %v446_v63 = vadd.f32 1.0, %v445_v44  ;;  %v509_v0 = vmul.f32 1.442695, %v508_v50  ;;  %vm1543_vm5 = vcmp.lt.f32.partialorder %v425_v35, 0.0004427343 }
 0x1d4   :  { %v383_v1 = vmul.f32 0.25, %v382_v42  ;;  %712 = vlog2.f32 %v488_v45  ;;  %v448_v3 = vand.u32 2147483647, %v699_v25  ;;  %v427_v5 = vsel %vm1543_vm5, %v424_v56, %v421_v46 }
 0x1d5   :  { %v362_v47 = vadd.f32 %v361_v16, %v340_v49  ;;  %v705_v38 = vpop.eup %704  ;;  %714 = vpow2.f32 %v509_v0  ;;  %v414_v8 = vmin.f32 %v413_v39, 0.0  ;;  %v437_v48 = vmin.f32 %v436_v60, 0.0 }
 0x1d6   :  { %v1547_v6 = vpop.eup %706  ;;  %v491_v13 = vmul.f32 -0.5, %v1526_v31  ;;  %v469_v17 = vadd.f32 1.0, %v468_v58  ;;  %v447_v19 = vmul.f32 %v699_v25, %v446_v63  ;;  %v406_v22 = vmul.f32 0.125, %v405_v55 }
 0x1d7   :  { %v709_v23 = vpop.eup %708  ;;  %v384_v10 = vadd.f32 %v383_v1, %v362_v47  ;;  %v557_v12 = vadd.f32 1.0, %v1547_v6  ;;  %v428_v24 = vsub.f32 %v414_v8, %v427_v5  ;;  %v471_v61 = vand.u32 2147483647, %v1516_v21 }
 0x1d8   :  { %v444_v18 = vmul.f32 0.6931472, %v709_v23  ;;  %v711_v20 = vpop.eup %710  ;;  %vm449_vm6 = vcmp.lt.f32.partialorder %v448_v3, 0.0004427343  ;;  %v467_v27 = vmul.f32 0.6931472, %v705_v38  ;;  %v470_v9 = vmul.f32 %v1516_v21, %v469_v17 }
 0x1d9   :  { %v534_v39 = vadd.f32 1.0, %v711_v20  ;;  %v407_v2 = vadd.f32 %v406_v22, %v384_v10  ;;  %716 = vlog2.f32 %v557_v12  ;;  %v492_v30 = vadd.f32 1.0, %v491_v13 }
 0x1da   :  { %v450_v37 = vsel %vm449_vm6, %v447_v19, %v444_v18  ;;  %v713_v26 = vpop.eup %712  ;;  %v537_v29 = vmul.f32 -0.5, %v711_v20  ;;  %v429_v25 = vmul.f32 0.125, %v428_v24  ;;  %v494_v4 = vand.u32 2147483647, %v1526_v31 }
 0x1db   :  { %v451_v54 = vsub.f32 %v437_v48, %v450_v37  ;;  %v715_v60 = vpop.eup %714  ;;  %718 = vlog2.f32 %v534_v39  ;;  %vm472_vm7 = vcmp.lt.f32.partialorder %v471_v61, 0.0004427343  ;;  %v490_v32 = vmul.f32 0.6931472, %v713_v26 }
 0x1dc   :  { %v511_v7 = vadd.f32 1.0, %v715_v60  ;;  %v473_v33 = vsel %vm472_vm7, %v470_v9, %v467_v27  ;;  %v560_v35 = vmul.f32 -0.5, %v1547_v6  ;;  %v514_v36 = vmul.f32 -0.5, %v715_v60 }
 0x1dd   :  { %v460_v40 = vmin.f32 %v459_v59, 0.0  ;;  %v430_v43 = vadd.f32 %v429_v25, %v407_v2  ;;  %v452_v44 = vmul.f32 0.125, %v451_v54  ;;  %v493_v21 = vmul.f32 %v1526_v31, %v492_v30 }
 0x1de   :  { %720 = vlog2.f32 %v511_v7  ;;  %v538_v42 = vadd.f32 1.0, %v537_v29  ;;  %vm495_vm8 = vcmp.lt.f32.partialorder %v494_v4, 0.0004427343  ;;  %v540_v16 = vand.u32 2147483647, %v711_v20 }
 0x1df   :  { %v717_v45 = vpop.eup %716  ;;  %v474_v41 = vsub.f32 %v460_v40, %v473_v33  ;;  %v483_v49 = vmin.f32 %v482_v57, 0.0  ;;  %v496_v50 = vsel %vm495_vm8, %v493_v21, %v490_v32  ;;  %v561_v55 = vadd.f32 1.0, %v560_v35 }
 0x1e0   :  { %v515_v56 = vadd.f32 1.0, %v514_v36  ;;  %v453_v47 = vadd.f32 %v452_v44, %v430_v43  ;;  %v563_v53 = vand.u32 2147483647, %v1547_v6  ;;  %v517_v58 = vand.u32 2147483647, %v715_v60 }
 0x1e1   :  { %v719_v46 = vpop.eup %718  ;;  %v559_v63 = vmul.f32 0.6931472, %v717_v45  ;;  %v539_v0 = vmul.f32 %v711_v20, %v538_v42  ;;  %v497_v38 = vsub.f32 %v483_v49, %v496_v50  ;;  %v475_v11 = vmul.f32 0.125, %v474_v41 }
 0x1e2   :  { %v536_v59 = vmul.f32 0.6931472, %v719_v46  ;;  %v529_v1 = vmin.f32 %v528_v52, 0.0  ;;  %vm541_vm9 = vcmp.lt.f32.partialorder %v540_v16, 0.0004427343  ;;  %v562_v51 = vmul.f32 %v1547_v6, %v561_v55 }
 0x1e3   :  { %v516_v5 = vmul.f32 %v715_v60, %v515_v56  ;;  %v476_v23 = vadd.f32 %v475_v11, %v453_v47  ;;  %vm564_vm10 = vcmp.lt.f32.partialorder %v563_v53, 0.0004427343  ;;  %v506_v8 = vmin.f32 %v505_v15, 0.0 }
 0x1e4   :  { %v721_v31 = vpop.eup %720  ;;  %v542_v57 = vsel %vm541_vm9, %v539_v0, %v536_v59  ;;  %vm518_vm11 = vcmp.lt.f32.partialorder %v517_v58, 0.0004427343  ;;  %v565_v10 = vsel %vm564_vm10, %v562_v51, %v559_v63  ;;  %v498_v12 = vmul.f32 0.125, %v497_v38 }
 0x1e5   :  { %v513_v3 = vmul.f32 0.6931472, %v721_v31  ;;  %v552_v13 = vmin.f32 %v551_v28, 0.0  ;;  %v543_v34 = vsub.f32 %v529_v1, %v542_v57  ;;  %v571_v22 = vlaneseq }
 0x1e6   :  { %v499_v18 = vadd.f32 %v498_v12, %v476_v23 }
 0x1e7   :  { %v519_v48 = vsel %vm518_vm11, %v516_v5, %v513_v3  ;;  %v566_v17 = vsub.f32 %v552_v13, %v565_v10  ;;  %v544_v19 = vmul.f32 0.125, %v543_v34  ;;  %v572_v62 = vand.u32 127, %v571_v22 }
 0x1e8   :  { %v520_v52 = vsub.f32 %v506_v8, %v519_v48 }
 0x1e9   :  { %v567_v24 = vmul.f32 0.125, %v566_v17 }
 0x1ea   :  { %v521_v6 = vmul.f32 0.125, %v520_v52 }
 0x1ec   :  { %v522_v20 = vadd.f32 %v521_v6, %v499_v18 }
 0x1ee   :  { %v545_v61 = vadd.f32 %v544_v19, %v522_v20 }
 0x1f0   :  { %v568_v27 = vadd.f32 %v567_v24, %v545_v61 }
 0x1f2   :  { %v569_v14 = vsub.f32 0.0, %v568_v27 }
 0x1f4   :  { %v573_v28 = vperm.slane %v569_v14, %v572_v62 }
 0x1f6   :  { %576 = vst.msk [vmem:[#allocation8] sm:$0x1] %vm575_vm12, %v573_v28 }
 0x1f7   :  { %587 = dma.vmem_to_hbm [thread:$0]  %s583_s3, 16, %s585_s18, [#allocation9]  }
 0x1f8   :  { %1096 = dma.done.wait [#allocation9], 16  }
 0x1f9   :  { %1097 = vsyncadd [#allocation9], 4294967280 }
 0x1fa   :  { %592 = vsyncpa [#allocation9], 1 }
 0x1fb   :  { %593 = vsyncmov [#allocation4] }
 0x1fe   :  { %s594_s6 = vpop.sfrf %593 }
 0x1ff   :  { %p653_p6 = scmp.ne.s32.totalorder %s594_s6, 0 }
 0x201   :  { %598 = shalt.err (%p653_p6)  }
 0x202   :  { %600 = vsyncmov [#allocation4 + $0x1] }
 0x205   :  { %s601_s1 = vpop.sfrf %600 }
 0x206   :  { %p654_p7 = scmp.ne.s32.totalorder %s601_s1, 0 }
 0x208   :  { %605 = shalt.err (%p654_p7)  }

</bundles_post_ra>
